<compile_context>
chip_gen: v7x
topology: tpu7x:2x2x1
jax: 0.10.0
libtpu: 0.0.40
codegen_flags: <defaults>
</compile_context>

<pallas_src>
import math
import functools

import jax
import jax.numpy as jnp
import numpy as np
from jax.experimental import pallas as pl
from jax.experimental.pallas import tpu as pltpu


# --------------------------------------------------------------------------
# Kernel: one encoder layer for one batch element (grid = (batch, layer))
# --------------------------------------------------------------------------
def encoder_layer_kernel(x_ref, pe_ref, wq_ref, wk_ref, wv_ref, wo_ref,
                         bqkv_ref, w1_ref, b1_ref, w2_ref, vec_ref,
                         o_ref, x_scr, *, num_heads, mm_dtype, approx_recip):
    l = pl.program_id(1)
    num_layers = pl.num_programs(1)

    S, D = x_scr.shape
    H = num_heads
    hd = D // H
    scale = 1.0 / math.sqrt(hd)

    # First layer: add positional encoding; activation stays resident in VMEM.
    @pl.when(l == 0)
    def _():
        x_scr[...] = (x_ref[0].astype(jnp.float32) +
                      pe_ref[...].astype(jnp.float32))

    x = x_scr[...]                       # [S, D] f32 (residual / stats dtype)
    xc = x.astype(mm_dtype)              # matmul operand dtype

    bqkv = bqkv_ref[...].astype(jnp.float32)      # [3, H, hd]  (q/k/v biases)
    vec = vec_ref[...].astype(jnp.float32)        # [6, D]
    bo, g1, be1, b2, g2, be2 = [vec[i] for i in range(6)]

    def layer_norm(v, g, b):
        mu = jnp.mean(v, axis=-1, keepdims=True)
        var = jnp.mean((v - mu) ** 2, axis=-1, keepdims=True)
        return (v - mu) * jax.lax.rsqrt(var + 1e-5) * g + b

    # ---- multi-head self attention (per-head; no lane slicing, no stacks) ----
    attn = jnp.zeros((S, D), jnp.float32)
    for h in range(H):
        q_h = (jnp.dot(xc, wq_ref[h], preferred_element_type=jnp.float32)
               + bqkv[0, h]) * scale                                   # [S, hd]
        k_h = jnp.dot(xc, wk_ref[h], preferred_element_type=jnp.float32) + bqkv[1, h]
        v_h = jnp.dot(xc, wv_ref[h], preferred_element_type=jnp.float32) + bqkv[2, h]

        # scores = q_h @ k_h^T  (contract head dim directly; no transpose copy)
        s = jax.lax.dot_general(q_h.astype(mm_dtype), k_h.astype(mm_dtype),
                                (((1,), (1,)), ((), ())),
                                preferred_element_type=jnp.float32)    # [S, S]
        m = jnp.max(s, axis=-1, keepdims=True)
        p = jnp.exp(s - m)
        denom = jnp.sum(p, axis=-1, keepdims=True)                     # [S, 1]

        ctx = jnp.dot(p.astype(mm_dtype), v_h.astype(mm_dtype),
                      preferred_element_type=jnp.float32)              # [S, hd]
        # Normalize after P@V: scales [S, hd] instead of [S, S].
        ctx = ctx * pl.reciprocal(denom, approx=approx_recip)

        # Output projection folded per head and accumulated:
        #   sum_h ctx_h @ Wo[h*hd:(h+1)*hd, :] == concat(ctx_heads) @ Wo
        attn = attn + jnp.dot(ctx.astype(mm_dtype), wo_ref[h],
                              preferred_element_type=jnp.float32)      # [S, D]
    attn = attn + bo

    src = layer_norm(x + attn, g1, be1)

    # ---- feed forward ----------------------------------------------------
    b1 = b1_ref[...].astype(jnp.float32)                               # [1, F]
    ff = jnp.maximum(
        jnp.dot(src.astype(mm_dtype), w1_ref[...],
                preferred_element_type=jnp.float32) + b1, 0.0)
    y = jnp.dot(ff.astype(mm_dtype), w2_ref[...],
                preferred_element_type=jnp.float32) + b2
    out = layer_norm(src + y, g2, be2)

    x_scr[...] = out

    @pl.when(l == num_layers - 1)
    def _():
        o_ref[0] = out.astype(o_ref.dtype)


# --------------------------------------------------------------------------
# Wrapper
# --------------------------------------------------------------------------
def transformer_encoder(x, pe, layer_params, num_heads, *, param_dtype=jnp.float32):
    B, S, D = x.shape
    L = len(layer_params)
    H = num_heads
    hd = D // H
    F = layer_params[0]["w1"].shape[-1]

    stack = lambda name: jnp.stack([p[name] for p in layer_params], axis=0)

    # Head-major weights, stacked over layers; matmul operands in param_dtype.
    wq = stack("wq").reshape(L, D, H, hd).transpose(0, 2, 1, 3).astype(param_dtype)  # [L,H,D,hd]
    wk = stack("wk").reshape(L, D, H, hd).transpose(0, 2, 1, 3).astype(param_dtype)
    wv = stack("wv").reshape(L, D, H, hd).transpose(0, 2, 1, 3).astype(param_dtype)
    wo = stack("wo").reshape(L, H, hd, D).astype(param_dtype)                        # [L,H,hd,D]
    w1 = stack("w1").astype(param_dtype)                                             # [L,D,F]
    w2 = stack("w2").astype(param_dtype)                                             # [L,F,D]

    # Small per-layer params packed into a few arrays (kept f32).
    bqkv = jnp.stack(
        [jnp.stack([p[n].reshape(H, hd) for n in ("bq", "bk", "bv")], axis=0)
         for p in layer_params], axis=0).astype(jnp.float32)                         # [L,3,H,hd]
    vec6 = jnp.stack(
        [jnp.stack([p[n].reshape(D) for n in ("bo", "g1", "be1", "b2", "g2", "be2")],
                   axis=0)
         for p in layer_params], axis=0).astype(jnp.float32)                         # [L,6,D]
    b1 = jnp.stack([p["b1"].reshape(1, F) for p in layer_params],
                   axis=0).astype(jnp.float32)                                       # [L,1,F]

    lmap4 = lambda b, l: (l, 0, 0, 0)
    lmap3 = lambda b, l: (l, 0, 0)

    in_specs = [
        pl.BlockSpec((1, S, D), lambda b, l: (b, 0, 0)),      # x
        pl.BlockSpec((S, D), lambda b, l: (0, 0)),            # positional encoding
        pl.BlockSpec((None, H, D, hd), lmap4),                # wq (head-major, per layer)
        pl.BlockSpec((None, H, D, hd), lmap4),                # wk
        pl.BlockSpec((None, H, D, hd), lmap4),                # wv
        pl.BlockSpec((None, H, hd, D), lmap4),                # wo (head-major, per layer)
        pl.BlockSpec((None, 3, H, hd), lmap4),                # packed q/k/v biases
        pl.BlockSpec((None, D, F), lmap3),                    # w1
        pl.BlockSpec((None, 1, F), lmap3),                    # b1
        pl.BlockSpec((None, F, D), lmap3),                    # w2
        pl.BlockSpec((None, 6, D), lmap3),                    # bo, g1, be1, b2, g2, be2
    ]

    approx = np.dtype(param_dtype) != np.dtype(np.float32)
    kernel = functools.partial(encoder_layer_kernel, num_heads=H,
                               mm_dtype=param_dtype, approx_recip=approx)

    # TODO(synk): if B can be 1 at deployment, add a second parallel axis over
    # S-tiles so both v7x TensorCores get work.
    return pl.pallas_call(
        kernel,
        out_shape=jax.ShapeDtypeStruct((B, S, D), x.dtype),
        grid=(B, L),
        in_specs=in_specs,
        out_specs=pl.BlockSpec((1, S, D), lambda b, l: (b, 0, 0)),
        scratch_shapes=[pltpu.VMEM((S, D), jnp.float32)],
        compiler_params=pltpu.CompilerParams(
            dimension_semantics=("parallel", "arbitrary"),
            vmem_limit_bytes=48 * 1024 * 1024),
    )(x, pe, wq, wk, wv, wo, bqkv, w1, b1, w2, vec6)


# --------------------------------------------------------------------------
# Pure-JAX reference (for verification)
# --------------------------------------------------------------------------
def ref_layer_norm(v, g, b):
    mu = jnp.mean(v, axis=-1, keepdims=True)
    var = jnp.mean((v - mu) ** 2, axis=-1, keepdims=True)
    return (v - mu) / jnp.sqrt(var + 1e-5) * g + b


def ref_encoder(x, pe, layer_params, num_heads):
    x = x + pe[None]
    B, S, D = x.shape
    hd = D // num_heads
    for p in layer_params:
        q = (x @ p["wq"] + p["bq"]).reshape(B, S, num_heads, hd).transpose(0, 2, 1, 3)
        k = (x @ p["wk"] + p["bk"]).reshape(B, S, num_heads, hd).transpose(0, 2, 1, 3)
        v = (x @ p["wv"] + p["bv"]).reshape(B, S, num_heads, hd).transpose(0, 2, 1, 3)
        s = jnp.einsum("bhqd,bhkd->bhqk", q, k) / math.sqrt(hd)
        a = jax.nn.softmax(s, axis=-1)
        o = jnp.einsum("bhqk,bhkd->bhqd", a, v).transpose(0, 2, 1, 3).reshape(B, S, D)
        o = o @ p["wo"] + p["bo"]
        x = ref_layer_norm(x + o, p["g1"], p["be1"])
        f = jnp.maximum(x @ p["w1"] + p["b1"], 0.0) @ p["w2"] + p["b2"]
        x = ref_layer_norm(x + f, p["g2"], p["be2"])
    return x


# --------------------------------------------------------------------------
# Parameter init (deterministic, synthetic) + positional encoding
# --------------------------------------------------------------------------
def init_layer_params(key, d_model, num_heads, dim_feedforward):
    ks = jax.random.split(key, 12)
    n = lambda k, shape, s=0.05: (s * jax.random.normal(k, shape)).astype(jnp.float32)
    return {
        "wq": n(ks[0], (d_model, d_model)), "bq": n(ks[1], (1, d_model)),
        "wk": n(ks[2], (d_model, d_model)), "bk": n(ks[3], (1, d_model)),
        "wv": n(ks[4], (d_model, d_model)), "bv": n(ks[5], (1, d_model)),
        "wo": n(ks[6], (d_model, d_model)), "bo": n(ks[7], (1, d_model)),
        "g1": 1.0 + n(ks[8], (1, d_model)), "be1": n(ks[9], (1, d_model)),
        "w1": n(ks[10], (d_model, dim_feedforward)),
        "b1": jnp.zeros((1, dim_feedforward), jnp.float32),
        "w2": n(ks[11], (dim_feedforward, d_model)),
        "b2": jnp.zeros((1, d_model), jnp.float32),
        "g2": jnp.ones((1, d_model), jnp.float32),
        "be2": jnp.zeros((1, d_model), jnp.float32),
    }


def make_positional_encoding(seq_len, d_model):
    pos = jnp.arange(seq_len, dtype=jnp.float32)[:, None]
    div = jnp.exp(jnp.arange(0, d_model, 2, dtype=jnp.float32)
                  * (-math.log(10000.0) / d_model))
    pe = jnp.zeros((seq_len, d_model), jnp.float32)
    pe = pe.at[:, 0::2].set(jnp.sin(pos * div))
    pe = pe.at[:, 1::2].set(jnp.cos(pos * div))
    return pe


# --------------------------------------------------------------------------
if __name__ == "__main__":
    B, S, D, H, F = 2, 8, 32, 4, 64
    NUM_LAYERS = 2

    key = jax.random.PRNGKey(0)
    kx, *layer_keys = jax.random.split(key, NUM_LAYERS + 1)

    x = jax.random.normal(kx, (B, S, D), dtype=jnp.float32)
    pe = make_positional_encoding(S, D)
    layer_params = [init_layer_params(k, D, H, F) for k in layer_keys]

    ref = ref_encoder(x, pe, layer_params, H)

    # f32 matmul operands: tight numerical check.
    out = jax.block_until_ready(
        transformer_encoder(x, pe, layer_params, H, param_dtype=jnp.float32))
    np.testing.assert_allclose(np.asarray(out), np.asarray(ref),
                               rtol=5e-5, atol=5e-5)

    # bf16 matmul operands (production path on v6e/v7x), f32 accumulation and
    # f32 softmax / layer-norm statistics: looser tolerance.
    out_bf16 = jax.block_until_ready(
        transformer_encoder(x, pe, layer_params, H, param_dtype=jnp.bfloat16))
    np.testing.assert_allclose(np.asarray(out_bf16), np.asarray(ref),
                               rtol=5e-2, atol=5e-2)

    print("KERNEL_OK")
</pallas_src>

<mosaic_0001>
module attributes {stable_mosaic.version = 11 : i64} {
  func.func @encoder_layer_kernel(%arg0: i32, %arg1: i32, %arg2: memref<1x8x32xf32, #tpu.memory_space<vmem>>, %arg3: memref<8x32xf32, #tpu.memory_space<vmem>>, %arg4: memref<1x4x32x8xf32, #tpu.memory_space<vmem>>, %arg5: memref<1x4x32x8xf32, #tpu.memory_space<vmem>>, %arg6: memref<1x4x32x8xf32, #tpu.memory_space<vmem>>, %arg7: memref<1x4x8x32xf32, #tpu.memory_space<vmem>>, %arg8: memref<1x3x4x8xf32, #tpu.memory_space<vmem>>, %arg9: memref<1x32x64xf32, #tpu.memory_space<vmem>>, %arg10: memref<1x1x64xf32, #tpu.memory_space<vmem>>, %arg11: memref<1x64x32xf32, #tpu.memory_space<vmem>>, %arg12: memref<1x6x32xf32, #tpu.memory_space<vmem>>, %arg13: memref<1x8x32xf32, #tpu.memory_space<vmem>>, %arg14: memref<8x32xf32, #tpu.memory_space<vmem>>) attributes {dimension_semantics = [#tpu.dimension_semantics<parallel>, #tpu.dimension_semantics<arbitrary>], iteration_bounds = array<i64: 2, 2>, scalar_prefetch = 0 : i64, scratch_operands = 1 : i64, tpu.core_type = #tpu.core_type<tc>, window_params = [{transform_indices = @transform_0, window_bounds = array<i64: 1, 8, 32>}, {pipeline_mode = #tpu.pipeline_mode<synchronous>, transform_indices = @transform_1, window_bounds = array<i64: 8, 32>}, {transform_indices = @transform_2, window_bounds = array<i64: 1, 4, 32, 8>}, {transform_indices = @transform_3, window_bounds = array<i64: 1, 4, 32, 8>}, {transform_indices = @transform_4, window_bounds = array<i64: 1, 4, 32, 8>}, {transform_indices = @transform_5, window_bounds = array<i64: 1, 4, 8, 32>}, {transform_indices = @transform_6, window_bounds = array<i64: 1, 3, 4, 8>}, {transform_indices = @transform_7, window_bounds = array<i64: 1, 32, 64>}, {transform_indices = @transform_8, window_bounds = array<i64: 1, 1, 64>}, {transform_indices = @transform_9, window_bounds = array<i64: 1, 64, 32>}, {transform_indices = @transform_10, window_bounds = array<i64: 1, 6, 32>}, {transform_indices = @transform_11, window_bounds = array<i64: 1, 8, 32>}]} {
    %c0_i32 = arith.constant 0 : i32
    %0 = arith.cmpi eq, %arg1, %c0_i32 : i32
    %1 = arith.extui %0 : i1 to i32
    %c0_i32_0 = arith.constant 0 : i32
    %2 = arith.cmpi ne, %1, %c0_i32_0 : i32
    scf.if %2 {
      %c0_131 = arith.constant 0 : index
      %c0_132 = arith.constant 0 : index
      %c0_133 = arith.constant 0 : index
      %261 = vector.load %arg2[%c0_131, %c0_132, %c0_133] : memref<1x8x32xf32, #tpu.memory_space<vmem>>, vector<1x8x32xf32>
      %262 = vector.shape_cast %261 : vector<1x8x32xf32> to vector<8x32xf32>
      %c0_134 = arith.constant 0 : index
      %c0_135 = arith.constant 0 : index
      %263 = vector.load %arg3[%c0_134, %c0_135] : memref<8x32xf32, #tpu.memory_space<vmem>>, vector<8x32xf32>
      %264 = arith.addf %262, %263 : vector<8x32xf32>
      %c0_136 = arith.constant 0 : index
      %c0_137 = arith.constant 0 : index
      %265 = vector.load %arg14[%c0_136, %c0_137] : memref<8x32xf32, #tpu.memory_space<vmem>>, vector<8x32xf32>
      tpu.vector_store %arg14[%c0_136, %c0_137], %264 {strides = array<i32>} : memref<8x32xf32, #tpu.memory_space<vmem>>, vector<8x32xf32>,
    } else {
    }
    %c0 = arith.constant 0 : index
    %c0_1 = arith.constant 0 : index
    %3 = vector.load %arg14[%c0, %c0_1] : memref<8x32xf32, #tpu.memory_space<vmem>>, vector<8x32xf32>
    %c0_2 = arith.constant 0 : index
    %c0_3 = arith.constant 0 : index
    %c0_4 = arith.constant 0 : index
    %c0_5 = arith.constant 0 : index
    %4 = vector.load %arg8[%c0_2, %c0_3, %c0_4, %c0_5] : memref<1x3x4x8xf32, #tpu.memory_space<vmem>>, vector<1x3x4x8xf32>
    %5 = vector.shape_cast %4 : vector<1x3x4x8xf32> to vector<3x4x8xf32>
    %c0_6 = arith.constant 0 : index
    %c0_7 = arith.constant 0 : index
    %c0_8 = arith.constant 0 : index
    %6 = vector.load %arg12[%c0_6, %c0_7, %c0_8] : memref<1x6x32xf32, #tpu.memory_space<vmem>>, vector<1x6x32xf32>
    %7 = vector.shape_cast %6 : vector<1x6x32xf32> to vector<6x32xf32>
    %8 = vector.extract_strided_slice %7 {offsets = [0, 0], sizes = [1, 32], strides = [1, 1]} : vector<6x32xf32> to vector<1x32xf32>
    %9 = vector.shape_cast %8 : vector<1x32xf32> to vector<32xf32>
    %10 = vector.extract_strided_slice %7 {offsets = [1, 0], sizes = [1, 32], strides = [1, 1]} : vector<6x32xf32> to vector<1x32xf32>
    %11 = vector.shape_cast %10 : vector<1x32xf32> to vector<32xf32>
    %12 = vector.extract_strided_slice %7 {offsets = [2, 0], sizes = [1, 32], strides = [1, 1]} : vector<6x32xf32> to vector<1x32xf32>
    %13 = vector.shape_cast %12 : vector<1x32xf32> to vector<32xf32>
    %14 = vector.extract_strided_slice %7 {offsets = [3, 0], sizes = [1, 32], strides = [1, 1]} : vector<6x32xf32> to vector<1x32xf32>
    %15 = vector.shape_cast %14 : vector<1x32xf32> to vector<32xf32>
    %16 = vector.extract_strided_slice %7 {offsets = [4, 0], sizes = [1, 32], strides = [1, 1]} : vector<6x32xf32> to vector<1x32xf32>
    %17 = vector.shape_cast %16 : vector<1x32xf32> to vector<32xf32>
    %18 = vector.extract_strided_slice %7 {offsets = [5, 0], sizes = [1, 32], strides = [1, 1]} : vector<6x32xf32> to vector<1x32xf32>
    %19 = vector.shape_cast %18 : vector<1x32xf32> to vector<32xf32>
    %cst = arith.constant 0.000000e+00 : f32
    %20 = vector.broadcast %cst : f32 to vector<8x32xf32>
    %c0_9 = arith.constant 0 : index
    %c0_10 = arith.constant 0 : index
    %c0_11 = arith.constant 0 : index
    %c0_12 = arith.constant 0 : index
    %21 = vector.load %arg4[%c0_9, %c0_10, %c0_11, %c0_12] : memref<1x4x32x8xf32, #tpu.memory_space<vmem>>, vector<1x1x32x8xf32>
    %22 = vector.shape_cast %21 : vector<1x1x32x8xf32> to vector<32x8xf32>
    %cst_13 = arith.constant dense<0.000000e+00> : vector<8x8xf32>
    %23 = tpu.matmul %3, %22, %cst_13 {dimension_numbers = #tpu.dot_dimension_numbers<[1], [0], [0], [1], [0, 0, 1, 1], [], []>} : vector<8x32xf32>, vector<32x8xf32>, vector<8x8xf32> -> vector<8x8xf32>
    %24 = vector.extract_strided_slice %5 {offsets = [0, 0, 0], sizes = [1, 1, 8], strides = [1, 1, 1]} : vector<3x4x8xf32> to vector<1x1x8xf32>
    %25 = vector.shape_cast %24 : vector<1x1x8xf32> to vector<8xf32>
    %26 = vector.shape_cast %25 : vector<8xf32> to vector<1x8xf32>
    %27 = vector.broadcast %26 : vector<1x8xf32> to vector<8x8xf32>
    %28 = arith.addf %23, %27 : vector<8x8xf32>
    %cst_14 = arith.constant 0.353553385 : f32
    %29 = vector.broadcast %cst_14 : f32 to vector<8x8xf32>
    %30 = arith.mulf %28, %29 : vector<8x8xf32>
    %c0_15 = arith.constant 0 : index
    %c0_16 = arith.constant 0 : index
    %c0_17 = arith.constant 0 : index
    %c0_18 = arith.constant 0 : index
    %31 = vector.load %arg5[%c0_15, %c0_16, %c0_17, %c0_18] : memref<1x4x32x8xf32, #tpu.memory_space<vmem>>, vector<1x1x32x8xf32>
    %32 = vector.shape_cast %31 : vector<1x1x32x8xf32> to vector<32x8xf32>
    %cst_19 = arith.constant dense<0.000000e+00> : vector<8x8xf32>
    %33 = tpu.matmul %3, %32, %cst_19 {dimension_numbers = #tpu.dot_dimension_numbers<[1], [0], [0], [1], [0, 0, 1, 1], [], []>} : vector<8x32xf32>, vector<32x8xf32>, vector<8x8xf32> -> vector<8x8xf32>
    %34 = vector.extract_strided_slice %5 {offsets = [1, 0, 0], sizes = [1, 1, 8], strides = [1, 1, 1]} : vector<3x4x8xf32> to vector<1x1x8xf32>
    %35 = vector.shape_cast %34 : vector<1x1x8xf32> to vector<8xf32>
    %36 = vector.shape_cast %35 : vector<8xf32> to vector<1x8xf32>
    %37 = vector.broadcast %36 : vector<1x8xf32> to vector<8x8xf32>
    %38 = arith.addf %33, %37 : vector<8x8xf32>
    %c0_20 = arith.constant 0 : index
    %c0_21 = arith.constant 0 : index
    %c0_22 = arith.constant 0 : index
    %c0_23 = arith.constant 0 : index
    %39 = vector.load %arg6[%c0_20, %c0_21, %c0_22, %c0_23] : memref<1x4x32x8xf32, #tpu.memory_space<vmem>>, vector<1x1x32x8xf32>
    %40 = vector.shape_cast %39 : vector<1x1x32x8xf32> to vector<32x8xf32>
    %cst_24 = arith.constant dense<0.000000e+00> : vector<8x8xf32>
    %41 = tpu.matmul %3, %40, %cst_24 {dimension_numbers = #tpu.dot_dimension_numbers<[1], [0], [0], [1], [0, 0, 1, 1], [], []>} : vector<8x32xf32>, vector<32x8xf32>, vector<8x8xf32> -> vector<8x8xf32>
    %42 = vector.extract_strided_slice %5 {offsets = [2, 0, 0], sizes = [1, 1, 8], strides = [1, 1, 1]} : vector<3x4x8xf32> to vector<1x1x8xf32>
    %43 = vector.shape_cast %42 : vector<1x1x8xf32> to vector<8xf32>
    %44 = vector.shape_cast %43 : vector<8xf32> to vector<1x8xf32>
    %45 = vector.broadcast %44 : vector<1x8xf32> to vector<8x8xf32>
    %46 = arith.addf %41, %45 : vector<8x8xf32>
    %cst_25 = arith.constant dense<0.000000e+00> : vector<8x8xf32>
    %47 = tpu.matmul %30, %38, %cst_25 {dimension_numbers = #tpu.dot_dimension_numbers<[1], [1], [0], [0], [0, 0, 1, 0], [], []>} : vector<8x8xf32>, vector<8x8xf32>, vector<8x8xf32> -> vector<8x8xf32>
    %cst_26 = arith.constant dense<0xFF800000> : vector<8xf32>
    %48 = vector.multi_reduction <maximumf>, %47, %cst_26 [1] : vector<8x8xf32> to vector<8xf32>
    %49 = vector.shape_cast %48 : vector<8xf32> to vector<8x1xf32>
    %50 = vector.broadcast %49 : vector<8x1xf32> to vector<8x8xf32>
    %51 = arith.subf %47, %50 : vector<8x8xf32>
    %52 = math.exp %51 : vector<8x8xf32>
    %cst_27 = arith.constant dense<0.000000e+00> : vector<8xf32>
    %53 = vector.multi_reduction <add>, %52, %cst_27 [1] : vector<8x8xf32> to vector<8xf32>
    %54 = vector.shape_cast %53 : vector<8xf32> to vector<8x1xf32>
    %cst_28 = arith.constant dense<0.000000e+00> : vector<8x8xf32>
    %55 = tpu.matmul %52, %46, %cst_28 {dimension_numbers = #tpu.dot_dimension_numbers<[1], [0], [0], [1], [0, 0, 1, 1], [], []>} : vector<8x8xf32>, vector<8x8xf32>, vector<8x8xf32> -> vector<8x8xf32>
    %56 = tpu.reciprocal %54 : vector<8x1xf32> -> vector<8x1xf32>
    %57 = vector.broadcast %56 : vector<8x1xf32> to vector<8x8xf32>
    %58 = arith.mulf %55, %57 : vector<8x8xf32>
    %c0_29 = arith.constant 0 : index
    %c0_30 = arith.constant 0 : index
    %c0_31 = arith.constant 0 : index
    %c0_32 = arith.constant 0 : index
    %59 = vector.load %arg7[%c0_29, %c0_30, %c0_31, %c0_32] : memref<1x4x8x32xf32, #tpu.memory_space<vmem>>, vector<1x1x8x32xf32>
    %60 = vector.shape_cast %59 : vector<1x1x8x32xf32> to vector<8x32xf32>
    %cst_33 = arith.constant dense<0.000000e+00> : vector<8x32xf32>
    %61 = tpu.matmul %58, %60, %cst_33 {dimension_numbers = #tpu.dot_dimension_numbers<[1], [0], [0], [1], [0, 0, 1, 1], [], []>} : vector<8x8xf32>, vector<8x32xf32>, vector<8x32xf32> -> vector<8x32xf32>
    %62 = arith.addf %20, %61 : vector<8x32xf32>
    %c0_34 = arith.constant 0 : index
    %c1 = arith.constant 1 : index
    %c0_35 = arith.constant 0 : index
    %c0_36 = arith.constant 0 : index
    %63 = vector.load %arg4[%c0_34, %c1, %c0_35, %c0_36] : memref<1x4x32x8xf32, #tpu.memory_space<vmem>>, vector<1x1x32x8xf32>
    %64 = vector.shape_cast %63 : vector<1x1x32x8xf32> to vector<32x8xf32>
    %cst_37 = arith.constant dense<0.000000e+00> : vector<8x8xf32>
    %65 = tpu.matmul %3, %64, %cst_37 {dimension_numbers = #tpu.dot_dimension_numbers<[1], [0], [0], [1], [0, 0, 1, 1], [], []>} : vector<8x32xf32>, vector<32x8xf32>, vector<8x8xf32> -> vector<8x8xf32>
    %66 = vector.extract_strided_slice %5 {offsets = [0, 1, 0], sizes = [1, 1, 8], strides = [1, 1, 1]} : vector<3x4x8xf32> to vector<1x1x8xf32>
    %67 = vector.shape_cast %66 : vector<1x1x8xf32> to vector<8xf32>
    %68 = vector.shape_cast %67 : vector<8xf32> to vector<1x8xf32>
    %69 = vector.broadcast %68 : vector<1x8xf32> to vector<8x8xf32>
    %70 = arith.addf %65, %69 : vector<8x8xf32>
    %cst_38 = arith.constant 0.353553385 : f32
    %71 = vector.broadcast %cst_38 : f32 to vector<8x8xf32>
    %72 = arith.mulf %70, %71 : vector<8x8xf32>
    %c0_39 = arith.constant 0 : index
    %c1_40 = arith.constant 1 : index
    %c0_41 = arith.constant 0 : index
    %c0_42 = arith.constant 0 : index
    %73 = vector.load %arg5[%c0_39, %c1_40, %c0_41, %c0_42] : memref<1x4x32x8xf32, #tpu.memory_space<vmem>>, vector<1x1x32x8xf32>
    %74 = vector.shape_cast %73 : vector<1x1x32x8xf32> to vector<32x8xf32>
    %cst_43 = arith.constant dense<0.000000e+00> : vector<8x8xf32>
    %75 = tpu.matmul %3, %74, %cst_43 {dimension_numbers = #tpu.dot_dimension_numbers<[1], [0], [0], [1], [0, 0, 1, 1], [], []>} : vector<8x32xf32>, vector<32x8xf32>, vector<8x8xf32> -> vector<8x8xf32>
    %76 = vector.extract_strided_slice %5 {offsets = [1, 1, 0], sizes = [1, 1, 8], strides = [1, 1, 1]} : vector<3x4x8xf32> to vector<1x1x8xf32>
    %77 = vector.shape_cast %76 : vector<1x1x8xf32> to vector<8xf32>
    %78 = vector.shape_cast %77 : vector<8xf32> to vector<1x8xf32>
    %79 = vector.broadcast %78 : vector<1x8xf32> to vector<8x8xf32>
    %80 = arith.addf %75, %79 : vector<8x8xf32>
    %c0_44 = arith.constant 0 : index
    %c1_45 = arith.constant 1 : index
    %c0_46 = arith.constant 0 : index
    %c0_47 = arith.constant 0 : index
    %81 = vector.load %arg6[%c0_44, %c1_45, %c0_46, %c0_47] : memref<1x4x32x8xf32, #tpu.memory_space<vmem>>, vector<1x1x32x8xf32>
    %82 = vector.shape_cast %81 : vector<1x1x32x8xf32> to vector<32x8xf32>
    %cst_48 = arith.constant dense<0.000000e+00> : vector<8x8xf32>
    %83 = tpu.matmul %3, %82, %cst_48 {dimension_numbers = #tpu.dot_dimension_numbers<[1], [0], [0], [1], [0, 0, 1, 1], [], []>} : vector<8x32xf32>, vector<32x8xf32>, vector<8x8xf32> -> vector<8x8xf32>
    %84 = vector.extract_strided_slice %5 {offsets = [2, 1, 0], sizes = [1, 1, 8], strides = [1, 1, 1]} : vector<3x4x8xf32> to vector<1x1x8xf32>
    %85 = vector.shape_cast %84 : vector<1x1x8xf32> to vector<8xf32>
    %86 = vector.shape_cast %85 : vector<8xf32> to vector<1x8xf32>
    %87 = vector.broadcast %86 : vector<1x8xf32> to vector<8x8xf32>
    %88 = arith.addf %83, %87 : vector<8x8xf32>
    %cst_49 = arith.constant dense<0.000000e+00> : vector<8x8xf32>
    %89 = tpu.matmul %72, %80, %cst_49 {dimension_numbers = #tpu.dot_dimension_numbers<[1], [1], [0], [0], [0, 0, 1, 0], [], []>} : vector<8x8xf32>, vector<8x8xf32>, vector<8x8xf32> -> vector<8x8xf32>
    %cst_50 = arith.constant dense<0xFF800000> : vector<8xf32>
    %90 = vector.multi_reduction <maximumf>, %89, %cst_50 [1] : vector<8x8xf32> to vector<8xf32>
    %91 = vector.shape_cast %90 : vector<8xf32> to vector<8x1xf32>
    %92 = vector.broadcast %91 : vector<8x1xf32> to vector<8x8xf32>
    %93 = arith.subf %89, %92 : vector<8x8xf32>
    %94 = math.exp %93 : vector<8x8xf32>
    %cst_51 = arith.constant dense<0.000000e+00> : vector<8xf32>
    %95 = vector.multi_reduction <add>, %94, %cst_51 [1] : vector<8x8xf32> to vector<8xf32>
    %96 = vector.shape_cast %95 : vector<8xf32> to vector<8x1xf32>
    %cst_52 = arith.constant dense<0.000000e+00> : vector<8x8xf32>
    %97 = tpu.matmul %94, %88, %cst_52 {dimension_numbers = #tpu.dot_dimension_numbers<[1], [0], [0], [1], [0, 0, 1, 1], [], []>} : vector<8x8xf32>, vector<8x8xf32>, vector<8x8xf32> -> vector<8x8xf32>
    %98 = tpu.reciprocal %96 : vector<8x1xf32> -> vector<8x1xf32>
    %99 = vector.broadcast %98 : vector<8x1xf32> to vector<8x8xf32>
    %100 = arith.mulf %97, %99 : vector<8x8xf32>
    %c0_53 = arith.constant 0 : index
    %c1_54 = arith.constant 1 : index
    %c0_55 = arith.constant 0 : index
    %c0_56 = arith.constant 0 : index
    %101 = vector.load %arg7[%c0_53, %c1_54, %c0_55, %c0_56] : memref<1x4x8x32xf32, #tpu.memory_space<vmem>>, vector<1x1x8x32xf32>
    %102 = vector.shape_cast %101 : vector<1x1x8x32xf32> to vector<8x32xf32>
    %cst_57 = arith.constant dense<0.000000e+00> : vector<8x32xf32>
    %103 = tpu.matmul %100, %102, %cst_57 {dimension_numbers = #tpu.dot_dimension_numbers<[1], [0], [0], [1], [0, 0, 1, 1], [], []>} : vector<8x8xf32>, vector<8x32xf32>, vector<8x32xf32> -> vector<8x32xf32>
    %104 = arith.addf %62, %103 : vector<8x32xf32>
    %c0_58 = arith.constant 0 : index
    %c2 = arith.constant 2 : index
    %c0_59 = arith.constant 0 : index
    %c0_60 = arith.constant 0 : index
    %105 = vector.load %arg4[%c0_58, %c2, %c0_59, %c0_60] : memref<1x4x32x8xf32, #tpu.memory_space<vmem>>, vector<1x1x32x8xf32>
    %106 = vector.shape_cast %105 : vector<1x1x32x8xf32> to vector<32x8xf32>
    %cst_61 = arith.constant dense<0.000000e+00> : vector<8x8xf32>
    %107 = tpu.matmul %3, %106, %cst_61 {dimension_numbers = #tpu.dot_dimension_numbers<[1], [0], [0], [1], [0, 0, 1, 1], [], []>} : vector<8x32xf32>, vector<32x8xf32>, vector<8x8xf32> -> vector<8x8xf32>
    %108 = vector.extract_strided_slice %5 {offsets = [0, 2, 0], sizes = [1, 1, 8], strides = [1, 1, 1]} : vector<3x4x8xf32> to vector<1x1x8xf32>
    %109 = vector.shape_cast %108 : vector<1x1x8xf32> to vector<8xf32>
    %110 = vector.shape_cast %109 : vector<8xf32> to vector<1x8xf32>
    %111 = vector.broadcast %110 : vector<1x8xf32> to vector<8x8xf32>
    %112 = arith.addf %107, %111 : vector<8x8xf32>
    %cst_62 = arith.constant 0.353553385 : f32
    %113 = vector.broadcast %cst_62 : f32 to vector<8x8xf32>
    %114 = arith.mulf %112, %113 : vector<8x8xf32>
    %c0_63 = arith.constant 0 : index
    %c2_64 = arith.constant 2 : index
    %c0_65 = arith.constant 0 : index
    %c0_66 = arith.constant 0 : index
    %115 = vector.load %arg5[%c0_63, %c2_64, %c0_65, %c0_66] : memref<1x4x32x8xf32, #tpu.memory_space<vmem>>, vector<1x1x32x8xf32>
    %116 = vector.shape_cast %115 : vector<1x1x32x8xf32> to vector<32x8xf32>
    %cst_67 = arith.constant dense<0.000000e+00> : vector<8x8xf32>
    %117 = tpu.matmul %3, %116, %cst_67 {dimension_numbers = #tpu.dot_dimension_numbers<[1], [0], [0], [1], [0, 0, 1, 1], [], []>} : vector<8x32xf32>, vector<32x8xf32>, vector<8x8xf32> -> vector<8x8xf32>
    %118 = vector.extract_strided_slice %5 {offsets = [1, 2, 0], sizes = [1, 1, 8], strides = [1, 1, 1]} : vector<3x4x8xf32> to vector<1x1x8xf32>
    %119 = vector.shape_cast %118 : vector<1x1x8xf32> to vector<8xf32>
    %120 = vector.shape_cast %119 : vector<8xf32> to vector<1x8xf32>
    %121 = vector.broadcast %120 : vector<1x8xf32> to vector<8x8xf32>
    %122 = arith.addf %117, %121 : vector<8x8xf32>
    %c0_68 = arith.constant 0 : index
    %c2_69 = arith.constant 2 : index
    %c0_70 = arith.constant 0 : index
    %c0_71 = arith.constant 0 : index
    %123 = vector.load %arg6[%c0_68, %c2_69, %c0_70, %c0_71] : memref<1x4x32x8xf32, #tpu.memory_space<vmem>>, vector<1x1x32x8xf32>
    %124 = vector.shape_cast %123 : vector<1x1x32x8xf32> to vector<32x8xf32>
    %cst_72 = arith.constant dense<0.000000e+00> : vector<8x8xf32>
    %125 = tpu.matmul %3, %124, %cst_72 {dimension_numbers = #tpu.dot_dimension_numbers<[1], [0], [0], [1], [0, 0, 1, 1], [], []>} : vector<8x32xf32>, vector<32x8xf32>, vector<8x8xf32> -> vector<8x8xf32>
    %126 = vector.extract_strided_slice %5 {offsets = [2, 2, 0], sizes = [1, 1, 8], strides = [1, 1, 1]} : vector<3x4x8xf32> to vector<1x1x8xf32>
    %127 = vector.shape_cast %126 : vector<1x1x8xf32> to vector<8xf32>
    %128 = vector.shape_cast %127 : vector<8xf32> to vector<1x8xf32>
    %129 = vector.broadcast %128 : vector<1x8xf32> to vector<8x8xf32>
    %130 = arith.addf %125, %129 : vector<8x8xf32>
    %cst_73 = arith.constant dense<0.000000e+00> : vector<8x8xf32>
    %131 = tpu.matmul %114, %122, %cst_73 {dimension_numbers = #tpu.dot_dimension_numbers<[1], [1], [0], [0], [0, 0, 1, 0], [], []>} : vector<8x8xf32>, vector<8x8xf32>, vector<8x8xf32> -> vector<8x8xf32>
    %cst_74 = arith.constant dense<0xFF800000> : vector<8xf32>
    %132 = vector.multi_reduction <maximumf>, %131, %cst_74 [1] : vector<8x8xf32> to vector<8xf32>
    %133 = vector.shape_cast %132 : vector<8xf32> to vector<8x1xf32>
    %134 = vector.broadcast %133 : vector<8x1xf32> to vector<8x8xf32>
    %135 = arith.subf %131, %134 : vector<8x8xf32>
    %136 = math.exp %135 : vector<8x8xf32>
    %cst_75 = arith.constant dense<0.000000e+00> : vector<8xf32>
    %137 = vector.multi_reduction <add>, %136, %cst_75 [1] : vector<8x8xf32> to vector<8xf32>
    %138 = vector.shape_cast %137 : vector<8xf32> to vector<8x1xf32>
    %cst_76 = arith.constant dense<0.000000e+00> : vector<8x8xf32>
    %139 = tpu.matmul %136, %130, %cst_76 {dimension_numbers = #tpu.dot_dimension_numbers<[1], [0], [0], [1], [0, 0, 1, 1], [], []>} : vector<8x8xf32>, vector<8x8xf32>, vector<8x8xf32> -> vector<8x8xf32>
    %140 = tpu.reciprocal %138 : vector<8x1xf32> -> vector<8x1xf32>
    %141 = vector.broadcast %140 : vector<8x1xf32> to vector<8x8xf32>
    %142 = arith.mulf %139, %141 : vector<8x8xf32>
    %c0_77 = arith.constant 0 : index
    %c2_78 = arith.constant 2 : index
    %c0_79 = arith.constant 0 : index
    %c0_80 = arith.constant 0 : index
    %143 = vector.load %arg7[%c0_77, %c2_78, %c0_79, %c0_80] : memref<1x4x8x32xf32, #tpu.memory_space<vmem>>, vector<1x1x8x32xf32>
    %144 = vector.shape_cast %143 : vector<1x1x8x32xf32> to vector<8x32xf32>
    %cst_81 = arith.constant dense<0.000000e+00> : vector<8x32xf32>
    %145 = tpu.matmul %142, %144, %cst_81 {dimension_numbers = #tpu.dot_dimension_numbers<[1], [0], [0], [1], [0, 0, 1, 1], [], []>} : vector<8x8xf32>, vector<8x32xf32>, vector<8x32xf32> -> vector<8x32xf32>
    %146 = arith.addf %104, %145 : vector<8x32xf32>
    %c0_82 = arith.constant 0 : index
    %c3 = arith.constant 3 : index
    %c0_83 = arith.constant 0 : index
    %c0_84 = arith.constant 0 : index
    %147 = vector.load %arg4[%c0_82, %c3, %c0_83, %c0_84] : memref<1x4x32x8xf32, #tpu.memory_space<vmem>>, vector<1x1x32x8xf32>
    %148 = vector.shape_cast %147 : vector<1x1x32x8xf32> to vector<32x8xf32>
    %cst_85 = arith.constant dense<0.000000e+00> : vector<8x8xf32>
    %149 = tpu.matmul %3, %148, %cst_85 {dimension_numbers = #tpu.dot_dimension_numbers<[1], [0], [0], [1], [0, 0, 1, 1], [], []>} : vector<8x32xf32>, vector<32x8xf32>, vector<8x8xf32> -> vector<8x8xf32>
    %150 = vector.extract_strided_slice %5 {offsets = [0, 3, 0], sizes = [1, 1, 8], strides = [1, 1, 1]} : vector<3x4x8xf32> to vector<1x1x8xf32>
    %151 = vector.shape_cast %150 : vector<1x1x8xf32> to vector<8xf32>
    %152 = vector.shape_cast %151 : vector<8xf32> to vector<1x8xf32>
    %153 = vector.broadcast %152 : vector<1x8xf32> to vector<8x8xf32>
    %154 = arith.addf %149, %153 : vector<8x8xf32>
    %cst_86 = arith.constant 0.353553385 : f32
    %155 = vector.broadcast %cst_86 : f32 to vector<8x8xf32>
    %156 = arith.mulf %154, %155 : vector<8x8xf32>
    %c0_87 = arith.constant 0 : index
    %c3_88 = arith.constant 3 : index
    %c0_89 = arith.constant 0 : index
    %c0_90 = arith.constant 0 : index
    %157 = vector.load %arg5[%c0_87, %c3_88, %c0_89, %c0_90] : memref<1x4x32x8xf32, #tpu.memory_space<vmem>>, vector<1x1x32x8xf32>
    %158 = vector.shape_cast %157 : vector<1x1x32x8xf32> to vector<32x8xf32>
    %cst_91 = arith.constant dense<0.000000e+00> : vector<8x8xf32>
    %159 = tpu.matmul %3, %158, %cst_91 {dimension_numbers = #tpu.dot_dimension_numbers<[1], [0], [0], [1], [0, 0, 1, 1], [], []>} : vector<8x32xf32>, vector<32x8xf32>, vector<8x8xf32> -> vector<8x8xf32>
    %160 = vector.extract_strided_slice %5 {offsets = [1, 3, 0], sizes = [1, 1, 8], strides = [1, 1, 1]} : vector<3x4x8xf32> to vector<1x1x8xf32>
    %161 = vector.shape_cast %160 : vector<1x1x8xf32> to vector<8xf32>
    %162 = vector.shape_cast %161 : vector<8xf32> to vector<1x8xf32>
    %163 = vector.broadcast %162 : vector<1x8xf32> to vector<8x8xf32>
    %164 = arith.addf %159, %163 : vector<8x8xf32>
    %c0_92 = arith.constant 0 : index
    %c3_93 = arith.constant 3 : index
    %c0_94 = arith.constant 0 : index
    %c0_95 = arith.constant 0 : index
    %165 = vector.load %arg6[%c0_92, %c3_93, %c0_94, %c0_95] : memref<1x4x32x8xf32, #tpu.memory_space<vmem>>, vector<1x1x32x8xf32>
    %166 = vector.shape_cast %165 : vector<1x1x32x8xf32> to vector<32x8xf32>
    %cst_96 = arith.constant dense<0.000000e+00> : vector<8x8xf32>
    %167 = tpu.matmul %3, %166, %cst_96 {dimension_numbers = #tpu.dot_dimension_numbers<[1], [0], [0], [1], [0, 0, 1, 1], [], []>} : vector<8x32xf32>, vector<32x8xf32>, vector<8x8xf32> -> vector<8x8xf32>
    %168 = vector.extract_strided_slice %5 {offsets = [2, 3, 0], sizes = [1, 1, 8], strides = [1, 1, 1]} : vector<3x4x8xf32> to vector<1x1x8xf32>
    %169 = vector.shape_cast %168 : vector<1x1x8xf32> to vector<8xf32>
    %170 = vector.shape_cast %169 : vector<8xf32> to vector<1x8xf32>
    %171 = vector.broadcast %170 : vector<1x8xf32> to vector<8x8xf32>
    %172 = arith.addf %167, %171 : vector<8x8xf32>
    %cst_97 = arith.constant dense<0.000000e+00> : vector<8x8xf32>
    %173 = tpu.matmul %156, %164, %cst_97 {dimension_numbers = #tpu.dot_dimension_numbers<[1], [1], [0], [0], [0, 0, 1, 0], [], []>} : vector<8x8xf32>, vector<8x8xf32>, vector<8x8xf32> -> vector<8x8xf32>
    %cst_98 = arith.constant dense<0xFF800000> : vector<8xf32>
    %174 = vector.multi_reduction <maximumf>, %173, %cst_98 [1] : vector<8x8xf32> to vector<8xf32>
    %175 = vector.shape_cast %174 : vector<8xf32> to vector<8x1xf32>
    %176 = vector.broadcast %175 : vector<8x1xf32> to vector<8x8xf32>
    %177 = arith.subf %173, %176 : vector<8x8xf32>
    %178 = math.exp %177 : vector<8x8xf32>
    %cst_99 = arith.constant dense<0.000000e+00> : vector<8xf32>
    %179 = vector.multi_reduction <add>, %178, %cst_99 [1] : vector<8x8xf32> to vector<8xf32>
    %180 = vector.shape_cast %179 : vector<8xf32> to vector<8x1xf32>
    %cst_100 = arith.constant dense<0.000000e+00> : vector<8x8xf32>
    %181 = tpu.matmul %178, %172, %cst_100 {dimension_numbers = #tpu.dot_dimension_numbers<[1], [0], [0], [1], [0, 0, 1, 1], [], []>} : vector<8x8xf32>, vector<8x8xf32>, vector<8x8xf32> -> vector<8x8xf32>
    %182 = tpu.reciprocal %180 : vector<8x1xf32> -> vector<8x1xf32>
    %183 = vector.broadcast %182 : vector<8x1xf32> to vector<8x8xf32>
    %184 = arith.mulf %181, %183 : vector<8x8xf32>
    %c0_101 = arith.constant 0 : index
    %c3_102 = arith.constant 3 : index
    %c0_103 = arith.constant 0 : index
    %c0_104 = arith.constant 0 : index
    %185 = vector.load %arg7[%c0_101, %c3_102, %c0_103, %c0_104] : memref<1x4x8x32xf32, #tpu.memory_space<vmem>>, vector<1x1x8x32xf32>
    %186 = vector.shape_cast %185 : vector<1x1x8x32xf32> to vector<8x32xf32>
    %cst_105 = arith.constant dense<0.000000e+00> : vector<8x32xf32>
    %187 = tpu.matmul %184, %186, %cst_105 {dimension_numbers = #tpu.dot_dimension_numbers<[1], [0], [0], [1], [0, 0, 1, 1], [], []>} : vector<8x8xf32>, vector<8x32xf32>, vector<8x32xf32> -> vector<8x32xf32>
    %188 = arith.addf %146, %187 : vector<8x32xf32>
    %189 = vector.shape_cast %9 : vector<32xf32> to vector<1x32xf32>
    %190 = vector.broadcast %189 : vector<1x32xf32> to vector<8x32xf32>
    %191 = arith.addf %188, %190 : vector<8x32xf32>
    %192 = arith.addf %3, %191 : vector<8x32xf32>
    %cst_106 = arith.constant dense<0.000000e+00> : vector<8xf32>
    %193 = vector.multi_reduction <add>, %192, %cst_106 [1] : vector<8x32xf32> to vector<8xf32>
    %194 = vector.shape_cast %193 : vector<8xf32> to vector<8x1xf32>
    %cst_107 = arith.constant 3.200000e+01 : f32
    %195 = vector.broadcast %cst_107 : f32 to vector<8x1xf32>
    %196 = arith.divf %194, %195 : vector<8x1xf32>
    %197 = vector.broadcast %196 : vector<8x1xf32> to vector<8x32xf32>
    %198 = arith.subf %192, %197 : vector<8x32xf32>
    %199 = arith.mulf %198, %198 : vector<8x32xf32>
    %cst_108 = arith.constant dense<0.000000e+00> : vector<8xf32>
    %200 = vector.multi_reduction <add>, %199, %cst_108 [1] : vector<8x32xf32> to vector<8xf32>
    %201 = vector.shape_cast %200 : vector<8xf32> to vector<8x1xf32>
    %cst_109 = arith.constant 3.200000e+01 : f32
    %202 = vector.broadcast %cst_109 : f32 to vector<8x1xf32>
    %203 = arith.divf %201, %202 : vector<8x1xf32>
    %204 = vector.broadcast %196 : vector<8x1xf32> to vector<8x32xf32>
    %205 = arith.subf %192, %204 : vector<8x32xf32>
    %cst_110 = arith.constant 9.99999974E-6 : f32
    %206 = vector.broadcast %cst_110 : f32 to vector<8x1xf32>
    %207 = arith.addf %203, %206 : vector<8x1xf32>
    %208 = math.rsqrt %207 : vector<8x1xf32>
    %209 = vector.broadcast %208 : vector<8x1xf32> to vector<8x32xf32>
    %210 = arith.mulf %205, %209 : vector<8x32xf32>
    %211 = vector.shape_cast %11 : vector<32xf32> to vector<1x32xf32>
    %212 = vector.broadcast %211 : vector<1x32xf32> to vector<8x32xf32>
    %213 = arith.mulf %210, %212 : vector<8x32xf32>
    %214 = vector.shape_cast %13 : vector<32xf32> to vector<1x32xf32>
    %215 = vector.broadcast %214 : vector<1x32xf32> to vector<8x32xf32>
    %216 = arith.addf %213, %215 : vector<8x32xf32>
    %c0_111 = arith.constant 0 : index
    %c0_112 = arith.constant 0 : index
    %c0_113 = arith.constant 0 : index
    %217 = vector.load %arg10[%c0_111, %c0_112, %c0_113] : memref<1x1x64xf32, #tpu.memory_space<vmem>>, vector<1x1x64xf32>
    %218 = vector.shape_cast %217 : vector<1x1x64xf32> to vector<1x64xf32>
    %c0_114 = arith.constant 0 : index
    %c0_115 = arith.constant 0 : index
    %c0_116 = arith.constant 0 : index
    %219 = vector.load %arg9[%c0_114, %c0_115, %c0_116] : memref<1x32x64xf32, #tpu.memory_space<vmem>>, vector<1x32x64xf32>
    %220 = vector.shape_cast %219 : vector<1x32x64xf32> to vector<32x64xf32>
    %cst_117 = arith.constant dense<0.000000e+00> : vector<8x64xf32>
    %221 = tpu.matmul %216, %220, %cst_117 {dimension_numbers = #tpu.dot_dimension_numbers<[1], [0], [0], [1], [0, 0, 1, 1], [], []>} : vector<8x32xf32>, vector<32x64xf32>, vector<8x64xf32> -> vector<8x64xf32>
    %222 = vector.broadcast %218 : vector<1x64xf32> to vector<8x64xf32>
    %223 = arith.addf %221, %222 : vector<8x64xf32>
    %cst_118 = arith.constant 0.000000e+00 : f32
    %224 = vector.broadcast %cst_118 : f32 to vector<8x64xf32>
    %225 = arith.maximumf %223, %224 : vector<8x64xf32>
    %c0_119 = arith.constant 0 : index
    %c0_120 = arith.constant 0 : index
    %c0_121 = arith.constant 0 : index
    %226 = vector.load %arg11[%c0_119, %c0_120, %c0_121] : memref<1x64x32xf32, #tpu.memory_space<vmem>>, vector<1x64x32xf32>
    %227 = vector.shape_cast %226 : vector<1x64x32xf32> to vector<64x32xf32>
    %cst_122 = arith.constant dense<0.000000e+00> : vector<8x32xf32>
    %228 = tpu.matmul %225, %227, %cst_122 {dimension_numbers = #tpu.dot_dimension_numbers<[1], [0], [0], [1], [0, 0, 1, 1], [], []>} : vector<8x64xf32>, vector<64x32xf32>, vector<8x32xf32> -> vector<8x32xf32>
    %229 = vector.shape_cast %15 : vector<32xf32> to vector<1x32xf32>
    %230 = vector.broadcast %229 : vector<1x32xf32> to vector<8x32xf32>
    %231 = arith.addf %228, %230 : vector<8x32xf32>
    %232 = arith.addf %216, %231 : vector<8x32xf32>
    %cst_123 = arith.constant dense<0.000000e+00> : vector<8xf32>
    %233 = vector.multi_reduction <add>, %232, %cst_123 [1] : vector<8x32xf32> to vector<8xf32>
    %234 = vector.shape_cast %233 : vector<8xf32> to vector<8x1xf32>
    %cst_124 = arith.constant 3.200000e+01 : f32
    %235 = vector.broadcast %cst_124 : f32 to vector<8x1xf32>
    %236 = arith.divf %234, %235 : vector<8x1xf32>
    %237 = vector.broadcast %236 : vector<8x1xf32> to vector<8x32xf32>
    %238 = arith.subf %232, %237 : vector<8x32xf32>
    %239 = arith.mulf %238, %238 : vector<8x32xf32>
    %cst_125 = arith.constant dense<0.000000e+00> : vector<8xf32>
    %240 = vector.multi_reduction <add>, %239, %cst_125 [1] : vector<8x32xf32> to vector<8xf32>
    %241 = vector.shape_cast %240 : vector<8xf32> to vector<8x1xf32>
    %cst_126 = arith.constant 3.200000e+01 : f32
    %242 = vector.broadcast %cst_126 : f32 to vector<8x1xf32>
    %243 = arith.divf %241, %242 : vector<8x1xf32>
    %244 = vector.broadcast %236 : vector<8x1xf32> to vector<8x32xf32>
    %245 = arith.subf %232, %244 : vector<8x32xf32>
    %cst_127 = arith.constant 9.99999974E-6 : f32
    %246 = vector.broadcast %cst_127 : f32 to vector<8x1xf32>
    %247 = arith.addf %243, %246 : vector<8x1xf32>
    %248 = math.rsqrt %247 : vector<8x1xf32>
    %249 = vector.broadcast %248 : vector<8x1xf32> to vector<8x32xf32>
    %250 = arith.mulf %245, %249 : vector<8x32xf32>
    %251 = vector.shape_cast %17 : vector<32xf32> to vector<1x32xf32>
    %252 = vector.broadcast %251 : vector<1x32xf32> to vector<8x32xf32>
    %253 = arith.mulf %250, %252 : vector<8x32xf32>
    %254 = vector.shape_cast %19 : vector<32xf32> to vector<1x32xf32>
    %255 = vector.broadcast %254 : vector<1x32xf32> to vector<8x32xf32>
    %256 = arith.addf %253, %255 : vector<8x32xf32>
    %c0_128 = arith.constant 0 : index
    %c0_129 = arith.constant 0 : index
    %257 = vector.load %arg14[%c0_128, %c0_129] : memref<8x32xf32, #tpu.memory_space<vmem>>, vector<8x32xf32>
    tpu.vector_store %arg14[%c0_128, %c0_129], %256 {strides = array<i32>} : memref<8x32xf32, #tpu.memory_space<vmem>>, vector<8x32xf32>,
    %c1_i32 = arith.constant 1 : i32
    %258 = arith.cmpi eq, %arg1, %c1_i32 : i32
    %259 = arith.extui %258 : i1 to i32
    %c0_i32_130 = arith.constant 0 : i32
    %260 = arith.cmpi ne, %259, %c0_i32_130 : i32
    scf.if %260 {
      %c0_131 = arith.constant 0 : index
      %c0_132 = arith.constant 0 : index
      %c0_133 = arith.constant 0 : index
      %261 = vector.load %arg13[%c0_131, %c0_132, %c0_133] : memref<1x8x32xf32, #tpu.memory_space<vmem>>, vector<1x8x32xf32>
      %262 = vector.shape_cast %261 : vector<1x8x32xf32> to vector<8x32xf32>
      %263 = vector.shape_cast %256 : vector<8x32xf32> to vector<1x8x32xf32>
      tpu.vector_store %arg13[%c0_131, %c0_132, %c0_133], %263 {strides = array<i32>} : memref<1x8x32xf32, #tpu.memory_space<vmem>>, vector<1x8x32xf32>,
    } else {
    }
    return
  }
  func.func @transform_0(%arg0: i32, %arg1: i32) -> (i32, i32, i32) {
    %c0_i32 = arith.constant 0 : i32
    %c0_i32_0 = arith.constant 0 : i32
    %c0_i32_1 = arith.constant 0 : i32
    return %arg0, %c0_i32, %c0_i32_0 : i32, i32, i32
  }
  func.func @transform_1(%arg0: i32, %arg1: i32) -> (i32, i32) {
    %c0_i32 = arith.constant 0 : i32
    %c0_i32_0 = arith.constant 0 : i32
    %c0_i32_1 = arith.constant 0 : i32
    return %c0_i32, %c0_i32_0 : i32, i32
  }
  func.func @transform_2(%arg0: i32, %arg1: i32) -> (i32, i32, i32, i32) {
    %c0_i32 = arith.constant 0 : i32
    %c0_i32_0 = arith.constant 0 : i32
    %c0_i32_1 = arith.constant 0 : i32
    %c0_i32_2 = arith.constant 0 : i32
    return %arg1, %c0_i32, %c0_i32_0, %c0_i32_1 : i32, i32, i32, i32
  }
  func.func @transform_3(%arg0: i32, %arg1: i32) -> (i32, i32, i32, i32) {
    %c0_i32 = arith.constant 0 : i32
    %c0_i32_0 = arith.constant 0 : i32
    %c0_i32_1 = arith.constant 0 : i32
    %c0_i32_2 = arith.constant 0 : i32
    return %arg1, %c0_i32, %c0_i32_0, %c0_i32_1 : i32, i32, i32, i32
  }
  func.func @transform_4(%arg0: i32, %arg1: i32) -> (i32, i32, i32, i32) {
    %c0_i32 = arith.constant 0 : i32
    %c0_i32_0 = arith.constant 0 : i32
    %c0_i32_1 = arith.constant 0 : i32
    %c0_i32_2 = arith.constant 0 : i32
    return %arg1, %c0_i32, %c0_i32_0, %c0_i32_1 : i32, i32, i32, i32
  }
  func.func @transform_5(%arg0: i32, %arg1: i32) -> (i32, i32, i32, i32) {
    %c0_i32 = arith.constant 0 : i32
    %c0_i32_0 = arith.constant 0 : i32
    %c0_i32_1 = arith.constant 0 : i32
    %c0_i32_2 = arith.constant 0 : i32
    return %arg1, %c0_i32, %c0_i32_0, %c0_i32_1 : i32, i32, i32, i32
  }
  func.func @transform_6(%arg0: i32, %arg1: i32) -> (i32, i32, i32, i32) {
    %c0_i32 = arith.constant 0 : i32
    %c0_i32_0 = arith.constant 0 : i32
    %c0_i32_1 = arith.constant 0 : i32
    %c0_i32_2 = arith.constant 0 : i32
    return %arg1, %c0_i32, %c0_i32_0, %c0_i32_1 : i32, i32, i32, i32
  }
  func.func @transform_7(%arg0: i32, %arg1: i32) -> (i32, i32, i32) {
    %c0_i32 = arith.constant 0 : i32
    %c0_i32_0 = arith.constant 0 : i32
    %c0_i32_1 = arith.constant 0 : i32
    return %arg1, %c0_i32, %c0_i32_0 : i32, i32, i32
  }
  func.func @transform_8(%arg0: i32, %arg1: i32) -> (i32, i32, i32) {
    %c0_i32 = arith.constant 0 : i32
    %c0_i32_0 = arith.constant 0 : i32
    %c0_i32_1 = arith.constant 0 : i32
    return %arg1, %c0_i32, %c0_i32_0 : i32, i32, i32
  }
  func.func @transform_9(%arg0: i32, %arg1: i32) -> (i32, i32, i32) {
    %c0_i32 = arith.constant 0 : i32
    %c0_i32_0 = arith.constant 0 : i32
    %c0_i32_1 = arith.constant 0 : i32
    return %arg1, %c0_i32, %c0_i32_0 : i32, i32, i32
  }
  func.func @transform_10(%arg0: i32, %arg1: i32) -> (i32, i32, i32) {
    %c0_i32 = arith.constant 0 : i32
    %c0_i32_0 = arith.constant 0 : i32
    %c0_i32_1 = arith.constant 0 : i32
    return %arg1, %c0_i32, %c0_i32_0 : i32, i32, i32
  }
  func.func @transform_11(%arg0: i32, %arg1: i32) -> (i32, i32, i32) {
    %c0_i32 = arith.constant 0 : i32
    %c0_i32_0 = arith.constant 0 : i32
    %c0_i32_1 = arith.constant 0 : i32
    return %arg0, %c0_i32, %c0_i32_0 : i32, i32, i32
  }
}

</mosaic_0001>

<bundles_post_ra>
// kernel: tpu_custom_call.1
= control target key start
LH: loop header
LB: loop body
LE: loop exit
PB: predicated region body
PF: predicated region fallthrough
CT: control target
= control target key end

     0   :  { %s4143_s0 = inlined_call_operand.vmem [shape: f32[2,8,32], index: 0, kind: input, shape index: {}]   ;;  %s4144_s1 = inlined_call_operand.vmem [shape: f32[8,32], index: 1, kind: input, shape index: {}]   ;;  %s4145_s2 = inlined_call_operand.vmem [shape: f32[2,4,32,8], index: 2, kind: input, shape index: {}]   ;;  %s4146_s3 = inlined_call_operand.vmem [shape: f32[2,4,32,8], index: 3, kind: input, shape index: {}]   ;;  %s4147_s4 = inlined_call_operand.vmem [shape: f32[2,4,32,8], index: 4, kind: input, shape index: {}]   ;;  %s4148_s5 = inlined_call_operand.vmem [shape: f32[2,4,8,32], index: 5, kind: input, shape index: {}]   ;;  %s4149_s6 = inlined_call_operand.vmem [shape: f32[2,3,4,8], index: 6, kind: input, shape index: {}]   ;;  %s4150_s7 = inlined_call_operand.vmem [shape: f32[2,32,64], index: 7, kind: input, shape index: {}]   ;;  %s4151_s8 = inlined_call_operand.vmem [shape: f32[2,1,64], index: 8, kind: input, shape index: {}]   ;;  %s4152_s9 = inlined_call_operand.vmem [shape: f32[2,64,32], index: 9, kind: input, shape index: {}]   ;;  %s4153_s10 = inlined_call_operand.vmem [shape: f32[2,6,32], index: 10, kind: input, shape index: {}]   ;;  %s4154_s11 = inlined_call_operand.hbm [shape: f32[2,8,32], index: 11, kind: output, shape index: {}]  }
   0x1   :  { %4169 = sst [smem:[#allocation18_spill]] %s4143_s0 }
   0x2   :  { %4170 = sst [smem:[#allocation19_spill]] %s4145_s2 }
   0x3   :  { %4171 = sst [smem:[#allocation20_spill]] %s4146_s3 }
   0x4   :  { %4172 = sst [smem:[#allocation21_spill]] %s4147_s4 }
   0x5   :  { %4173 = sst [smem:[#allocation22_spill]] %s4148_s5 }
   0x6   :  { %4174 = sst [smem:[#allocation23_spill]] %s4154_s11 }
   0x7   :  { %16 = vsyncpa [#allocation4], 0 }
   0x8   :  { %18 = vsyncpa [#allocation4 + $0x1], 0  ;;  %s3662_s17 = smov 0   ;;  %s3664_s18 = smov 0  }
   0x9   :  { %s3666_s19 = smov 0   ;;  %s3668_s20 = smov 0  }
   0xa   :  { %s3670_s21 = smov 0   ;;  %s3672_s22 = smov 0  }
   0xb   :  { %s3674_s23 = smov 0   ;;  %s3676_s24 = smov 0  }
   0xc LB: > { %4175 = sst [smem:[#allocation6_spill]] %s3568_s17  ;;  %s2894_s25 = sadd.s32 4294967295, %s3596_s24   ;;  %s3596_s24 = sphi %s3676_s24, %s24_s24   ;;  %s3592_s23 = sphi %s3674_s23, %s4208_s23   ;;  %s3588_s22 = sphi %s3672_s22, %s4207_s22   ;;  %s3584_s21 = sphi %s3670_s21, %s4206_s21   ;;  %s3580_s20 = sphi %s3668_s20, %s4205_s20   ;;  %s3576_s19 = sphi %s3666_s19, %s4204_s19   ;;  %s3572_s18 = sphi %s3664_s18, %s4203_s18   ;;  %s3568_s17 = sphi %s3662_s17, %s4202_s17  }
   0xd   : > { %4176 = sst [smem:[#allocation7_spill]] %s3572_s18  ;;  %s2895_s26 = sadd.s32 4294967294, %s3596_s24  }
   0xe   : > { %4177 = sst [smem:[#allocation8_spill]] %s3576_s19  ;;  %s33_s27 = sadd.s32 1, %s3588_s22 }
   0xf   : > { %4178 = sst [smem:[#allocation9_spill]] %s3584_s21  ;;  %p34_p0 = scmp.ge.s32.totalorder %s33_s27, 2 }
  0x10   : > { %4179 = sst [smem:[#allocation10_spill]] %s3588_s22  ;;  %s36_s28 = sadd.s32 1, %s3592_s23 }
  0x11   : > { %4180 = sst [smem:[#allocation11_spill]] %s3592_s23  ;;  %p334_p1 = scmp.ne.s32.totalorder %s3576_s19, %s3572_s18 }
  0x12   : > { %4181 = sst [smem:[#allocation12_spill]] %s3596_s24  ;;  %p335_p2 = scmp.eq.s32.totalorder %s2894_s25, 3 }
  0x13   : > { %s4210_s27 = smov (%p34_p0, %s33_s27), 0  ;;  %s4212_s28 = smov (!%p34_p0, %s36_s28), %s3592_s23 }
  0x14   : > { %4182 = sst [smem:[#allocation13_spill]] %s4210_s27  ;;  %p3711_p3 = por %p335_p2, %p334_p1 }
  0x15   : > { %p340_p4 = scmp.ne.s32.totalorder %s3572_s18, %s3568_s17  ;;  %p38_p5 = scmp.ge.s32.totalorder %s4212_s28, 2 }
  0x16   : > { %s4183_s29 = scalar_select %p3711_p3, 1, 0 }
  0x17   : > { %p341_p6 = scmp.eq.s32.totalorder %s2895_s26, 3  ;;  %p2898_p7 = scmp.ge.s32.totalorder %s3596_s24, 1 }
  0x18   : > { %4184 = sst [smem:[#allocation14_spill]] %s4183_s29  ;;  %p438_p8 = scmp.lt.s32.totalorder %s3596_s24, 5 }
  0x19   : > { %s4214_s28 = smov (%p38_p5, %s4212_s28), 0  ;;  %p3721_p9 = por %p341_p6, %p340_p4 }
  0x1a   : > { %4185 = sst [smem:[#allocation15_spill]] %s4214_s28  ;;  %p439_p10 = pnand %p2898_p7, %p438_p8 }
  0x1b   : > { %s4186_s30 = scalar_select %p3721_p9, 1, 0 }
  0x1c   : > { %s321_s12 = ssub.s32 %s3592_s23, %s4214_s28  ;;  %s324_s13 = sadd.s32 1, %s3576_s19 }
  0x1d   : > { %4187 = sst [smem:[#allocation16_spill]] %s4186_s30  ;;  %p322_p11 = scmp.eq.s32.totalorder %s321_s12, 0 }
  0x1e   : > { %442 = sbr.rel (%p439_p10) target bundleno = 4381 (0x111d), region = 64  ;;  %s4158_s15 = sand.u32 (!%p439_p10), 1, %s3572_s18  }
  0x1f   : > { %s3729_s14 = scalar_select %p322_p11, %s3576_s19, %s324_s13  }
  0x20   : > { %p519_p12 = scmp.lt.s32.totalorder (!%p439_p10), %s3584_s21, 1  ;;  %s3735_s16 = sshll.u32 (!%p439_p10), %s4158_s15, 3 }
  0x21   : > { %4188 = sst [smem:[#allocation17_spill]] %s3729_s14  ;;  %p523_p13 = scmp.lt.s32.totalorder (!%p439_p10), %s3580_s20, 1 }
  0x22   : > { %s4189_s0 = sld [smem:[#allocation18_spill]] (!%p439_p10)  ;;  %s4190_s2 = sld [smem:[#allocation19_spill]] (!%p439_p10) }
  0x23   : > { %s4191_s3 = sld [smem:[#allocation20_spill]] (!%p439_p10)  ;;  %s4192_s4 = sld [smem:[#allocation21_spill]] (!%p439_p10) }
  0x24   : > { %s4193_s5 = sld [smem:[#allocation22_spill]] (!%p439_p10)  ;;  %s518_s15 = scalar_lea.vmem (!%p439_p10), [#allocation3], %s3735_s16 }
  0x25   : > { %s520_s25 = scalar_select %p519_p12, %s3584_s21, 1 }
  0x26   : > { %s3740_s26 = scalar_select %p523_p13, %s3580_s20, 1 }
  0x27   : > { %s2900_s12 = sshll.u32 %s520_s25, 3  ;;  %p2915_p0 = scmp.ne.s32.totalorder %s3580_s20, 0 }
  0x28   : > { %s522_s27 = scalar_lea.vmem %s4189_s0, %s2900_s12  ;;  %s2991_s23 = sshll.u32 %s3740_s26, 7  ;;  %v570_v1 = vld [vmem:[%s4144_s1] sm:$0xff] (!%p2915_p0)  ;;  %vm572_vm0 = vcmask (!%p2915_p0), 261120  }
  0x29   : > { %s3749_s14 = scalar_lea.vmem %s4190_s2, %s2991_s23  ;;  %s3754_s17 = scalar_lea.vmem %s4191_s3, %s2991_s23  ;;  %v569_v0 = vld [vmem:[%s522_s27] sm:$0xff] (!%p2915_p0) }
  0x2a   : > { %s3759_s25 = scalar_lea.vmem %s4192_s4, %s2991_s23  ;;  %s2994_s29 = sshll.u32 %s3740_s26, 5  ;;  %v571_v2 = vadd.f32 (!%p2915_p0), %v570_v1, %v569_v0 }
  0x2b   : > { %s3765_s12 = scalar_lea.vmem %s4193_s5, %s2994_s29  ;;  %s3407_s0 = smul.u32 12, %s3740_s26 }
  0x2c   : > { %s3771_s2 = scalar_lea.vmem %s4150_s7, %s2994_s29  ;;  %s555_s3 = scalar_lea.vmem %s4151_s8, %s3740_s26  ;;  %573 = vst.msk [vmem:[#allocation2] sm:$0xff] (!%p2915_p0), %vm572_vm0, %v571_v2 }
  0x2d   : > { %s3780_s23 = scalar_lea.vmem %s4149_s6, %s3407_s0  ;;  %s2996_s24 = sshll.u32 %s3740_s26, 6 }
  0x2e   : > { %s3786_s13 = scalar_lea.vmem %s4152_s9, %s2996_s24  ;;  %s2914_s5 = sshll.u32 %s3740_s26, 3 }
  0x2f   : > { %s3792_s29 = scalar_lea.vmem %s4153_s10, %s2914_s5  ;;  %568 = sbr.rel (%p2915_p0) target bundleno = 54 (0x36), region = 68 }
  0x36 PF: > { %v579_v3 = vld [vmem:[%s3749_s14] sm:$0xff]  ;;  %v580_v4 = vld [vmem:[%s3749_s14 + $0x8] sm:$0xff]  ;;  %v3598_v6 = vmov 0.0|0.0   ;;  %v581_v9 = vld [vmem:[%s3749_s14 + $0x10] sm:$0xff]  ;;  %vm3599_vm1 = vmmov 0   ;;  %v3600_v14 = vmov 0.0   ;;  %v583_v24 = vlaneseq }
  0x37   : > { %v662_v5 = vld [vmem:[%s3754_s17] sm:$0xff]  ;;  %3317 = vmatprep.subr.bf16.mxu0 %v3598_v6  ;;  %3323 = vmatprep.subr.bf16.mxu1 %v3598_v6  ;;  %v3318_v7 = vpack.c.bf16 %v580_v4, %v579_v3  ;;  %v663_v8 = vld [vmem:[%s3754_s17 + $0x8] sm:$0xff]  ;;  %v582_v10 = vld [vmem:[%s3749_s14 + $0x18] sm:$0xff]  ;;  %vm587_vm2 = vcmask 261120   ;;  %vm818_vm3 = vcmask 64512   ;;  %vm2601_vm4 = vcmask 523264  }
  0x38   : > { %v3324_v11 = vpack.c.bf16 %v663_v8, %v662_v5  ;;  %v664_v12 = vld [vmem:[%s3754_s17 + $0x10] sm:$0xff]  ;;  %v665_v13 = vld [vmem:[%s3754_s17 + $0x18] sm:$0xff]  ;;  %3103 = vmatprep.mubr.msk.f32.mxu0 %vm3599_vm1, %v3600_v14  ;;  %3114 = vmatprep.mubr.msk.f32.mxu1 %vm3599_vm1, %v3600_v14  ;;  %v3321_v15 = vpack.c.bf16 %v582_v10, %v581_v9  ;;  %v740_v17 = vld [vmem:[%s3759_s25] sm:$0xff]  ;;  %v3837_v25 = vshrl.u32 %v583_v24, 7  ;;  %p2986_p1 = scmp.ne.s32.totalorder %s3580_s20, 1 }
  0x39   : > { %3319 = vmatpush3.bf16.msra.mxu0 %v3318_v7  ;;  %v3327_v16 = vpack.c.bf16 %v665_v13, %v664_v12  ;;  %v741_v18 = vld [vmem:[%s3759_s25 + $0x8] sm:$0xff]  ;;  %v3817_v19 = vld [vmem:[#allocation2] sm:$0xff]  ;;  %v742_v21 = vld [vmem:[%s3759_s25 + $0x10] sm:$0xff] }
  0x3a   : > { %3325 = vmatpush3.bf16.msra.mxu1 %v3324_v11  ;;  %3320 = vmatprep.subr.bf16.mxu0 %v3598_v6  ;;  %v3330_v20 = vpack.c.bf16 %v741_v18, %v740_v17  ;;  %v743_v22 = vld [vmem:[%s3759_s25 + $0x18] sm:$0xff]  ;;  %v3840_v26 = vsub.s32 0, %v3837_v25  ;;  %v3843_v27 = vld [vmem:[%s3780_s23] sm:$0xf]  ;;  %v3846_v28 = vld [vmem:[%s3780_s23 + $0x4] sm:$0xf] }
  0x3b   : > { %3326 = vmatprep.subr.bf16.mxu1 %v3598_v6  ;;  %v3333_v23 = vpack.c.bf16 %v743_v22, %v742_v21  ;;  %v3853_v37 = vld [vmem:[%s3780_s23 + $0x8] sm:$0xf]  ;;  %v2922_v46 = vld [vmem:[%s3749_s14 + $0x20] sm:$0xff]  ;;  %v2924_v49 = vld [vmem:[%s3749_s14 + $0x30] sm:$0xff]  ;;  %v3899_v8 = vsub.s32 1, %v3837_v25 }
  0x3c   : > { %v586_v29 = vrot.slane %v3843_v27, %v3840_v26  ;;  %v669_v30 = vrot.slane %v3846_v28, %v3840_v26  ;;  %v747_v39 = vrot.slane %v3853_v37, %v3840_v26  ;;  %v2923_v47 = vld [vmem:[%s3749_s14 + $0x28] sm:$0xff]  ;;  %v2925_v50 = vld [vmem:[%s3749_s14 + $0x38] sm:$0xff]  ;;  %v2927_v55 = vld [vmem:[%s3754_s17 + $0x20] sm:$0xff] }
  0x3d   : > { %3322 = vmatpush3.bf16.msra.mxu0 %v3321_v15  ;;  %v3336_v48 = vpack.c.bf16 %v2923_v47, %v2922_v46  ;;  %v3339_v51 = vpack.c.bf16 %v2925_v50, %v2924_v49  ;;  %v2928_v56 = vld [vmem:[%s3754_s17 + $0x28] sm:$0xff]  ;;  %v2929_v58 = vld [vmem:[%s3754_s17 + $0x30] sm:$0xff]  ;;  %v2930_v59 = vld [vmem:[%s3754_s17 + $0x38] sm:$0xff]  ;;  %v988_v11 = vrot.slane %v3843_v27, %v3899_v8  ;;  %v1068_v12 = vrot.slane %v3846_v28, %v3899_v8 }
  0x3e   : > { %3328 = vmatpush3.bf16.msra.mxu1 %v3327_v16  ;;  %3329 = vmatprep.subr.bf16.mxu0 %v3598_v6  ;;  %v3342_v57 = vpack.c.bf16 %v2928_v56, %v2927_v55  ;;  %v3345_v62 = vpack.c.bf16 %v2930_v59, %v2929_v58  ;;  %v2932_v1 = vld [vmem:[%s3759_s25 + $0x20] sm:$0xff]  ;;  %v2933_v2 = vld [vmem:[%s3759_s25 + $0x28] sm:$0xff]  ;;  %v2934_v3 = vld [vmem:[%s3759_s25 + $0x30] sm:$0xff] }
  0x3f   : > { %3133 = vmatprep.subr.mxu1 %v3600_v14  ;;  %v3348_v4 = vpack.c.bf16 %v2933_v2, %v2932_v1  ;;  %v2935_v5 = vld [vmem:[%s3759_s25 + $0x38] sm:$0xff]  ;;  %v2943_v49 = vld [vmem:[%s3749_s14 + $0x40] sm:$0xff]  ;;  %v2944_v50 = vld [vmem:[%s3749_s14 + $0x48] sm:$0xff] }
  0x40   : > { %3104 = vmatmul.mubr.msk.f32.vlgmr.msra.gmra.mrb[0].mxu0 %vm587_vm2, %v3817_v19  ;;  %v3351_v7 = vpack.c.bf16 %v2935_v5, %v2934_v3  ;;  %v2951_v46 = vld [vmem:[%s3754_s17 + $0x58] sm:$0xff]  ;;  %v2945_v56 = vld [vmem:[%s3749_s14 + $0x50] sm:$0xff]  ;;  %v2953_v2 = vld [vmem:[%s3759_s25 + $0x40] sm:$0xff] }
  0x41   : > { %3115 = vmatmul.mubr.msk.f32.vlgmr.msra.gmra.mrb[0].mxu1 %vm587_vm2, %v3817_v19  ;;  %3331 = vmatpush3.bf16.msra.mxu0 %v3330_v20  ;;  %v2954_v3 = vld [vmem:[%s3759_s25 + $0x48] sm:$0xff] }
  0x42   : > { %3332 = vmatprep.subr.bf16.mxu0 %v3598_v6  ;;  %3125 = vmatprep.mubr.msk.f32.mxu0 %vm3599_vm1, %v3600_v14  ;;  %v3366_v5 = vpack.c.bf16 %v2954_v3, %v2953_v2 }
  0x43   : > { %3135 = vmatprep.mubr.msk.f32.mxu1 %vm3599_vm1, %v3600_v14 }
  0x45   : > { %3334 = vmatpush3.bf16.msra.mxu0 %v3333_v23  ;;  %v1147_v23 = vrot.slane %v3853_v37, %v3899_v8 }
  0x46   : > { %3128 = vmatprep.subr.mxu0 %v3600_v14 }
  0x48   : > { %3126 = vmatmul.mubr.msk.f32.vlgmr.msra.gmra.mrb[2].mxu0 %vm587_vm2, %v3817_v19 }
  0x49   : > { %3130 = vmatprep.mubr.msk.f32.mxu0 %vm3599_vm1, %v3600_v14 }
 0x113   : > { %v657_v31 = vpop.f32.mrb[0].mxu0 }
 0x114   : > { %v658_v32 = vadd.f32 %v657_v31, %v586_v29  ;;  %v736_v33 = vpop.f32.mrb[0].mxu1  ;;  %v3105_v34 = vpop.f32.mrb[1].mxu0 }
 0x115   : > { %v737_v35 = vadd.f32 %v736_v33, %v669_v30  ;;  %v3116_v36 = vpop.f32.mrb[1].mxu1 }
 0x116   : > { %v661_v38 = vmul.f32 0.35355338, %v658_v32 }
 0x117   : > { %3129 = vmatpush3.xpose.msk.msra.mxu0 %vm818_vm3, %v737_v35  ;;  %v979_v35 = vld [vmem:[%s3765_s12] sm:$0xff] }
 0x118   : > { %3335 = vmatprep.subr.bf16.mxu0 %v3598_v6 }
 0x11a   : > { %3131 = vmatmul.mubr.msk.f32.vlgmr.msra.gmra.mrb[4].mxu0 %vm818_vm3, %v661_v38 }
 0x11b   : > { %v814_v40 = vpop.f32.mrb[2].mxu0  ;;  %3146 = vmatprep.mubr.msk.f32.mxu0 %vm3599_vm1, %v3600_v14  ;;  %3337 = vmatpush3.bf16.msra.mxu0 %v3336_v48 }
 0x11c   : > { %v815_v41 = vadd.f32 %v814_v40, %v747_v39  ;;  %v3127_v42 = vpop.f32.mrb[3].mxu0  ;;  %3338 = vmatprep.subr.bf16.mxu0 %v3598_v6 }
 0x11d   : > { %v2949_v42 = vld [vmem:[%s3754_s17 + $0x48] sm:$0xff] }
 0x11e   : > { %3134 = vmatpush3.msra.mxu1 %v815_v41  ;;  %v2948_v41 = vld [vmem:[%s3754_s17 + $0x40] sm:$0xff] }
 0x11f   : > { %3341 = vmatprep.subr.bf16.mxu1 %v3598_v6  ;;  %3340 = vmatpush3.bf16.msra.mxu0 %v3339_v51 }
 0x120   : > { %3347 = vmatprep.subr.bf16.mxu0 %v3598_v6 }
 0x122   : > { %3147 = vmatmul.mubr.msk.f32.vlgmr.msra.gmra.mrb[6].mxu0 %vm587_vm2, %v3817_v19 }
 0x123   : > { %3168 = vmatprep.mubr.msk.f32.mxu0 %vm3599_vm1, %v3600_v14  ;;  %3349 = vmatpush3.bf16.msra.mxu0 %v3348_v4  ;;  %v2955_v4 = vld [vmem:[%s3759_s25 + $0x50] sm:$0xff] }
 0x124   : > { %3350 = vmatprep.subr.bf16.mxu0 %v3598_v6 }
 0x127   : > { %3352 = vmatpush3.bf16.msra.mxu0 %v3351_v7  ;;  %v2956_v7 = vld [vmem:[%s3759_s25 + $0x58] sm:$0xff] }
 0x128   : > { %3181 = vmatprep.subr.mxu0 %v3600_v14 }
 0x12a   : > { %3169 = vmatmul.mubr.msk.f32.vlgmr.msra.gmra.mrb[8].mxu0 %vm587_vm2, %v3817_v19 }
 0x12b   : > { %3183 = vmatprep.mubr.msk.f32.mxu0 %vm3599_vm1, %v3600_v14 }
 0x1ed   : > { %v891_v43 = vpop.f32.mrb[4].mxu0 }
 0x1ee   : > { %v3132_v44 = vpop.f32.mrb[5].mxu0  ;;  %v895_v45 = vsel %vm818_vm3, %v891_v43, -inf }
 0x1ef   : > { %896 = vmax.xlane.f32.xlu0 %v895_v45  ;;  %v2940_v44 = vld [vmem:[%s3765_s12 + $0x8] sm:$0xff]  ;;  %v2950_v45 = vld [vmem:[%s3754_s17 + $0x50] sm:$0xff] }
 0x1f0   : > { %3182 = vmatpush3.msra.mxu0 %v2940_v44  ;;  %v3363_v47 = vpack.c.bf16 %v2951_v46, %v2950_v45  ;;  %v2968_v45 = vld [vmem:[%s3754_s17 + $0x60] sm:$0xff]  ;;  %v2969_v46 = vld [vmem:[%s3754_s17 + $0x68] sm:$0xff] }
 0x1f1   : > { %3353 = vmatprep.subr.bf16.mxu0 %v3598_v6 }
 0x1f5   : > { %v1055_v63 = vpop.f32.mrb[6].mxu0 }
 0x1f6   : > { %v3148_v0 = vpop.f32.mrb[7].mxu0  ;;  %v1056_v13 = vadd.f32 %v1055_v63, %v988_v11 }
 0x1f8   : > { %v1059_v18 = vmul.f32 0.35355338, %v1056_v13 }
 0x1fd   : > { %v1214_v24 = vpop.f32.mrb[8].mxu0 }
 0x1fe   : > { %v3170_v29 = vpop.f32.mrb[9].mxu0  ;;  %v1215_v30 = vadd.f32 %v1214_v24, %v1147_v23 }
 0x27c   : > { %v897_v52 = vpop.xlane.xlu0 %896 }
 0x27d   : > { %v898_v53 = vsub.f32 %v891_v43, %v897_v52  ;;  %v3360_v43 = vpack.c.bf16 %v2949_v42, %v2948_v41  ;;  %v2965_v41 = vld [vmem:[%s3749_s14 + $0x70] sm:$0xff]  ;;  %v2966_v42 = vld [vmem:[%s3749_s14 + $0x78] sm:$0xff] }
 0x27f   : > { %v899_v54 = vmul.f32 1.442695, %v898_v53  ;;  %v3354_v53 = vpack.c.bf16 %v2944_v50, %v2943_v49  ;;  %v3378_v49 = vpack.c.bf16 %v2969_v46, %v2968_v45  ;;  %v2505_v46 = vld [vmem:[%s3771_s2] sm:$0xff] }
 0x281   : > { %3482 = vpow2.f32 %v899_v54 }
 0x28b   : > { %v3483_v60 = vpop.eup %3482 }
 0x28c   : > { %3136 = vmatmul.mubr.msk.f32.vlgmr.msra.gmra.mrb[2].mxu1 %vm818_vm3, %v3483_v60  ;;  %v901_v61 = vsel %vm818_vm3, %v3483_v60, 0.0 }
 0x28d   : > { %3343 = vmatpush3.bf16.msra.mxu1 %v3342_v57  ;;  %902 = vadd.xlane.f32.xlu1 %v901_v61  ;;  %v2946_v57 = vld [vmem:[%s3749_s14 + $0x58] sm:$0xff]  ;;  %v3949_v61 = vsub.s32 2, %v3837_v25 }
 0x28e   : > { %3344 = vmatprep.subr.bf16.mxu1 %v3598_v6  ;;  %3157 = vmatprep.mubr.msk.f32.mxu1 %vm3599_vm1, %v3600_v14  ;;  %v3357_v59 = vpack.c.bf16 %v2946_v57, %v2945_v56  ;;  %v2973_v57 = vld [vmem:[%s3759_s25 + $0x60] sm:$0xff] }
 0x28f   : > { %v1534_v13 = vrot.slane %v3843_v27, %v3949_v61  ;;  %v1693_v23 = vrot.slane %v3853_v37, %v3949_v61 }
 0x291   : > { %3346 = vmatpush3.bf16.msra.mxu1 %v3345_v62  ;;  %v1614_v62 = vrot.slane %v3846_v28, %v3949_v61 }
 0x292   : > { %3171 = vmatprep.subr.mxu1 %v3600_v14 }
 0x294   : > { %3158 = vmatmul.mubr.msk.f32.vlgmr.msra.gmra.mrb[4].mxu1 %vm587_vm2, %v3817_v19 }
 0x295   : > { %3173 = vmatprep.mubr.msk.f32.mxu1 %vm3599_vm1, %v3600_v14 }
 0x31a   : > { %v903_v34 = vpop.xlane.xlu1 %902 }
 0x35f   : > { %v973_v9 = vpop.f32.mrb[2].mxu1 }
 0x360   : > { %v3137_v10 = vpop.f32.mrb[3].mxu1 }
 0x367   : > { %v1135_v15 = vpop.f32.mrb[4].mxu1 }
 0x368   : > { %v1136_v16 = vadd.f32 %v1135_v15, %v1068_v12  ;;  %v3159_v17 = vpop.f32.mrb[5].mxu1 }
 0x36a   : > { %3172 = vmatpush3.xpose.msk.msra.mxu1 %vm818_vm3, %v1136_v16 }
 0x36b   : > { %3176 = vmatprep.subr.mxu1 %v3600_v14 }
 0x36d   : > { %3174 = vmatmul.mubr.msk.f32.vlgmr.msra.gmra.mrb[6].mxu1 %vm818_vm3, %v1059_v18 }
 0x36e   : > { %3178 = vmatprep.mubr.msk.f32.mxu1 %vm3599_vm1, %v3600_v14  ;;  %3177 = vmatpush3.msra.mxu1 %v1215_v30 }
 0x36f   : > { %3186 = vmatprep.subr.mxu1 %v3600_v14 }
 0x440   : > { %v1290_v20 = vpop.f32.mrb[6].mxu1 }
 0x441   : > { %v3175_v21 = vpop.f32.mrb[7].mxu1  ;;  %v1294_v22 = vsel %vm818_vm3, %v1290_v20, -inf }
 0x442   : > { %1295 = vmax.xlane.f32.xlu0 %v1294_v22 }
 0x4cf   : > { %v1296_v31 = vpop.xlane.xlu0 %1295 }
 0x4d0   : > { %v1297_v32 = vsub.f32 %v1290_v20, %v1296_v31 }
 0x4d2   : > { %v1298_v33 = vmul.f32 1.442695, %v1297_v32 }
 0x4d4   : > { %3484 = vpow2.f32 %v1298_v33 }
 0x4d5   : > { %3486 = vrcp.f32 %v903_v34 }
 0x4de   : > { %v3485_v36 = vpop.eup %3484 }
 0x4df   : > { %3179 = vmatmul.mubr.msk.f32.vlgmr.msra.gmra.mrb[8].mxu1 %vm818_vm3, %v3485_v36  ;;  %v1300_v38 = vsel %vm818_vm3, %v3485_v36, 0.0  ;;  %v3487_v39 = vpop.eup %3486  ;;  %v2961_v36 = vld [vmem:[%s3765_s12 + $0x10] sm:$0xff] }
 0x4e0   : > { %1301 = vadd.xlane.f32.xlu1 %v1300_v38  ;;  %3187 = vmatpush3.msra.mxu1 %v979_v35  ;;  %v978_v40 = vmul.f32 %v3487_v39, %v973_v9  ;;  %v3369_v9 = vpack.c.bf16 %v2956_v7, %v2955_v4  ;;  %v2963_v38 = vld [vmem:[%s3749_s14 + $0x60] sm:$0xff]  ;;  %v2964_v39 = vld [vmem:[%s3749_s14 + $0x68] sm:$0xff] }
 0x4e1   : > { %3188 = vmatprep.mubr.msk.f32.mxu1 %vm3599_vm1, %v3600_v14  ;;  %3359 = vmatprep.subr.bf16.mxu1 %v3598_v6 }
 0x4e3   : > { %3189 = vmatmul.mubr.msk.f32.vlgmr.msra.gmra.mrb[10].mxu1 %vm818_vm3, %v978_v40  ;;  %v3372_v40 = vpack.c.bf16 %v2964_v39, %v2963_v38 }
 0x4e4   : > { %3210 = vmatprep.mubr.msk.f32.mxu1 %vm3599_vm1, %v3600_v14  ;;  %3361 = vmatpush3.bf16.msra.mxu1 %v3360_v43  ;;  %v3375_v43 = vpack.c.bf16 %v2966_v42, %v2965_v41 }
 0x4e5   : > { %3362 = vmatprep.subr.bf16.mxu1 %v3598_v6 }
 0x4e8   : > { %3364 = vmatpush3.bf16.msra.mxu1 %v3363_v47 }
 0x4e9   : > { %3224 = vmatprep.subr.mxu1 %v3600_v14 }
 0x4eb   : > { %3211 = vmatmul.mubr.msk.f32.vlgmr.msra.gmra.mrb[12].mxu1 %vm587_vm2, %v3817_v19 }
 0x4ec   : > { %3226 = vmatprep.mubr.msk.f32.mxu1 %vm3599_vm1, %v3600_v14 }
 0x56d   : > { %v1302_v48 = vpop.xlane.xlu1 %1301 }
 0x56e   : > { %3488 = vrcp.f32 %v1302_v48 }
 0x578   : > { %v3489_v51 = vpop.eup %3488 }
 0x5b2   : > { %v1372_v52 = vpop.f32.mrb[8].mxu1 }
 0x5b3   : > { %v1377_v54 = vmul.f32 %v3489_v51, %v1372_v52  ;;  %v3180_v55 = vpop.f32.mrb[9].mxu1  ;;  %v2970_v52 = vld [vmem:[%s3754_s17 + $0x70] sm:$0xff] }
 0x5b5   : > { %3184 = vmatmul.mubr.msk.f32.vlgmr.msra.gmra.mrb[10].mxu0 %vm818_vm3, %v1377_v54 }
 0x5b6   : > { %3355 = vmatpush3.bf16.msra.mxu0 %v3354_v53  ;;  %v1522_v58 = vpop.f32.mrb[10].mxu1  ;;  %3199 = vmatprep.mubr.msk.f32.mxu0 %vm3599_vm1, %v3600_v14  ;;  %v2971_v53 = vld [vmem:[%s3754_s17 + $0x78] sm:$0xff] }
 0x5b7   : > { %v3190_v60 = vpop.f32.mrb[11].mxu1  ;;  %3356 = vmatprep.subr.bf16.mxu0 %v3598_v6  ;;  %v3381_v54 = vpack.c.bf16 %v2971_v53, %v2970_v52  ;;  %v2590_v52 = vld [vmem:[%s3786_s13 + $0x8] sm:$0xff]  ;;  %v2591_v53 = vld [vmem:[%s3786_s13 + $0x10] sm:$0xff] }
 0x5ba   : > { %3358 = vmatpush3.bf16.msra.mxu0 %v3357_v59  ;;  %v2975_v59 = vld [vmem:[%s3759_s25 + $0x70] sm:$0xff] }
 0x5bb   : > { %3365 = vmatprep.subr.bf16.mxu0 %v3598_v6 }
 0x5bd   : > { %3200 = vmatmul.mubr.msk.f32.vlgmr.msra.gmra.mrb[12].mxu0 %vm587_vm2, %v3817_v19 }
 0x5be   : > { %3221 = vmatprep.mubr.msk.f32.mxu0 %vm3599_vm1, %v3600_v14  ;;  %v1681_v63 = vpop.f32.mrb[12].mxu1  ;;  %3367 = vmatpush3.bf16.msra.mxu0 %v3366_v5 }
 0x5bf   : > { %v1682_v0 = vadd.f32 %v1681_v63, %v1614_v62  ;;  %v3212_v1 = vpop.f32.mrb[13].mxu1  ;;  %3368 = vmatprep.subr.bf16.mxu0 %v3598_v6  ;;  %v2976_v62 = vld [vmem:[%s3759_s25 + $0x78] sm:$0xff] }
 0x5c0   : > { %v3387_v63 = vpack.c.bf16 %v2976_v62, %v2975_v59 }
 0x5c1   : > { %3225 = vmatpush3.xpose.msk.msra.mxu1 %vm818_vm3, %v1682_v0  ;;  %v4016_v0 = vsub.s32 3, %v3837_v25 }
 0x5c2   : > { %3229 = vmatprep.subr.mxu1 %v3600_v14  ;;  %3370 = vmatpush3.bf16.msra.mxu0 %v3369_v9 }
 0x5c3   : > { %3234 = vmatprep.subr.mxu0 %v3600_v14  ;;  %v2008_v4 = vrot.slane %v3843_v27, %v4016_v0  ;;  %v2088_v5 = vrot.slane %v3846_v28, %v4016_v0  ;;  %v2167_v28 = vrot.slane %v3853_v37, %v4016_v0  ;;  %v2981_v37 = vld [vmem:[%s3765_s12 + $0x18] sm:$0xff] }
 0x5c5   : > { %3222 = vmatmul.mubr.msk.f32.vlgmr.msra.gmra.mrb[14].mxu0 %vm587_vm2, %v3817_v19 }
 0x5c6   : > { %3236 = vmatprep.mubr.msk.f32.mxu0 %vm3599_vm1, %v3600_v14  ;;  %3235 = vmatpush3.msra.mxu0 %v2961_v36 }
 0x5c7   : > { %3377 = vmatprep.subr.bf16.mxu0 %v3598_v6 }
 0x688   : > { %v1449_v10 = vpop.f32.mrb[10].mxu0 }
 0x689   : > { %v3965_v11 = vadd.f32 %v1522_v58, %v1449_v10  ;;  %v3185_v12 = vpop.f32.mrb[11].mxu0  ;;  %v2974_v58 = vld [vmem:[%s3759_s25 + $0x68] sm:$0xff] }
 0x68a   : > { %v3384_v60 = vpack.c.bf16 %v2974_v58, %v2973_v57  ;;  %v2593_v57 = vld [vmem:[%s3786_s13 + $0x20] sm:$0xff]  ;;  %v2594_v58 = vld [vmem:[%s3786_s13 + $0x28] sm:$0xff] }
 0x68b   : > { %v3402_v59 = vpack.c.bf16 %v2594_v58, %v2593_v57 }
 0x690   : > { %v1601_v15 = vpop.f32.mrb[12].mxu0 }
 0x691   : > { %v1602_v16 = vadd.f32 %v1601_v15, %v1534_v13  ;;  %v3201_v17 = vpop.f32.mrb[13].mxu0 }
 0x693   : > { %v1605_v18 = vmul.f32 0.35355338, %v1602_v16 }
 0x695   : > { %3227 = vmatmul.mubr.msk.f32.vlgmr.msra.gmra.mrb[14].mxu1 %vm818_vm3, %v1605_v18 }
 0x696   : > { %3231 = vmatprep.mubr.msk.f32.mxu1 %vm3599_vm1, %v3600_v14 }
 0x698   : > { %v1760_v24 = vpop.f32.mrb[14].mxu0 }
 0x699   : > { %v3223_v29 = vpop.f32.mrb[15].mxu0  ;;  %v1761_v30 = vadd.f32 %v1760_v24, %v1693_v23 }
 0x69b   : > { %3230 = vmatpush3.msra.mxu1 %v1761_v30 }
 0x69c   : > { %3371 = vmatprep.subr.bf16.mxu1 %v3598_v6 }
 0x768   : > { %v1836_v20 = vpop.f32.mrb[14].mxu1 }
 0x769   : > { %v3228_v21 = vpop.f32.mrb[15].mxu1  ;;  %v1840_v22 = vsel %vm818_vm3, %v1836_v20, -inf }
 0x76a   : > { %1841 = vmax.xlane.f32.xlu0 %v1840_v22 }
 0x7f7   : > { %v1842_v31 = vpop.xlane.xlu0 %1841 }
 0x7f8   : > { %v1843_v32 = vsub.f32 %v1836_v20, %v1842_v31 }
 0x7fa   : > { %v1844_v33 = vmul.f32 1.442695, %v1843_v32 }
 0x7fc   : > { %3490 = vpow2.f32 %v1844_v33 }
 0x806   : > { %v3491_v34 = vpop.eup %3490 }
 0x807   : > { %3232 = vmatmul.mubr.msk.f32.vlgmr.msra.gmra.mrb[16].mxu1 %vm818_vm3, %v3491_v34  ;;  %v1846_v35 = vsel %vm818_vm3, %v3491_v34, 0.0  ;;  %v4042_v34 = vld [vmem:[%s3792_s29] sm:$0x3f] }
 0x808   : > { %1847 = vadd.xlane.f32.xlu1 %v1846_v35  ;;  %3247 = vmatprep.mubr.msk.f32.mxu1 %vm3599_vm1, %v3600_v14  ;;  %v2477_v35 = vrot.slane %v4042_v34, %v3840_v26 }
 0x809   : > { %3373 = vmatpush3.bf16.msra.mxu1 %v3372_v40 }
 0x80a   : > { %3374 = vmatprep.subr.bf16.mxu1 %v3598_v6 }
 0x80d   : > { %3376 = vmatpush3.bf16.msra.mxu1 %v3375_v43 }
 0x80e   : > { %3383 = vmatprep.subr.bf16.mxu1 %v3598_v6 }
 0x810   : > { %3248 = vmatmul.mubr.msk.f32.vlgmr.msra.gmra.mrb[18].mxu1 %vm587_vm2, %v3817_v19 }
 0x811   : > { %3269 = vmatprep.mubr.msk.f32.mxu1 %vm3599_vm1, %v3600_v14  ;;  %3385 = vmatpush3.bf16.msra.mxu1 %v3384_v60 }
 0x812   : > { %3386 = vmatprep.subr.bf16.mxu1 %v3598_v6 }
 0x815   : > { %3388 = vmatpush3.bf16.msra.mxu1 %v3387_v63 }
 0x816   : > { %3282 = vmatprep.subr.mxu1 %v3600_v14 }
 0x818   : > { %3270 = vmatmul.mubr.msk.f32.vlgmr.msra.gmra.mrb[20].mxu1 %vm587_vm2, %v3817_v19 }
 0x819   : > { %3284 = vmatprep.mubr.msk.f32.mxu1 %vm3599_vm1, %v3600_v14  ;;  %3283 = vmatpush3.msra.mxu1 %v2981_v37 }
 0x81a   : > { %3395 = vmatprep.subr.bf16.mxu1 %v3598_v6 }
 0x895   : > { %v1848_v44 = vpop.xlane.xlu1 %1847 }
 0x896   : > { %3492 = vrcp.f32 %v1848_v44 }
 0x8a0   : > { %v3493_v47 = vpop.eup %3492 }
 0x8da   : > { %v1918_v48 = vpop.f32.mrb[16].mxu1 }
 0x8db   : > { %v1923_v50 = vmul.f32 %v3493_v47, %v1918_v48  ;;  %v3233_v51 = vpop.f32.mrb[17].mxu1  ;;  %v2506_v47 = vld [vmem:[%s3771_s2 + $0x8] sm:$0xff] }
 0x8dc   : > { %v3390_v48 = vpack.c.bf16 %v2506_v47, %v2505_v46  ;;  %v2589_v51 = vld [vmem:[%s3786_s13] sm:$0xff] }
 0x8dd   : > { %3237 = vmatmul.mubr.msk.f32.vlgmr.msra.gmra.mrb[16].mxu0 %vm818_vm3, %v1923_v50 }
 0x8de   : > { %3379 = vmatpush3.bf16.msra.mxu0 %v3378_v49  ;;  %3258 = vmatprep.mubr.msk.f32.mxu0 %vm3599_vm1, %v3600_v14  ;;  %v2508_v49 = vld [vmem:[%s3771_s2 + $0x18] sm:$0xff] }
 0x8df   : > { %3380 = vmatprep.subr.bf16.mxu0 %v3598_v6 }
 0x8e2   : > { %3382 = vmatpush3.bf16.msra.mxu0 %v3381_v54  ;;  %v3396_v54 = vpack.c.bf16 %v2590_v52, %v2589_v51 }
 0x8e3   : > { %3272 = vmatprep.subr.mxu0 %v3600_v14  ;;  %v2075_v55 = vpop.f32.mrb[18].mxu1 }
 0x8e4   : > { %v3249_v56 = vpop.f32.mrb[19].mxu1  ;;  %v2076_v7 = vadd.f32 %v2075_v55, %v2008_v4  ;;  %v2592_v55 = vld [vmem:[%s3786_s13 + $0x18] sm:$0xff]  ;;  %v2502_v4 = vrot.slane %v4042_v34, %v3949_v61  ;;  %v2600_v61 = vrot.slane %v4042_v34, %v4016_v0  ;;  %v2691_v0 = vsub.s32 4, %v3837_v25 }
 0x8e5   : > { %3259 = vmatmul.mubr.msk.f32.vlgmr.msra.gmra.mrb[18].mxu0 %vm587_vm2, %v3817_v19  ;;  %v3399_v56 = vpack.c.bf16 %v2592_v55, %v2591_v53 }
 0x8e6   : > { %3274 = vmatprep.mubr.msk.f32.mxu0 %vm3599_vm1, %v3600_v14  ;;  %v2079_v13 = vmul.f32 0.35355338, %v2076_v7 }
 0x8eb   : > { %v2234_v16 = vpop.f32.mrb[20].mxu1 }
 0x8ec   : > { %v3271_v17 = vpop.f32.mrb[21].mxu1  ;;  %v2235_v18 = vadd.f32 %v2234_v16, %v2167_v28 }
 0x9b0   : > { %v1995_v1 = vpop.f32.mrb[16].mxu0 }
 0x9b1   : > { %v1999_v2 = vadd.f32 %v1995_v1, %v3965_v11  ;;  %v3238_v3 = vpop.f32.mrb[17].mxu0  ;;  %v2497_v1 = vrot.slane %v4042_v34, %v3899_v8 }
 0x9b8   : > { %v2155_v9 = vpop.f32.mrb[18].mxu0 }
 0x9b9   : > { %v2156_v10 = vadd.f32 %v2155_v9, %v2088_v5  ;;  %v3260_v12 = vpop.f32.mrb[19].mxu0  ;;  %v2595_v9 = vld [vmem:[%s3786_s13 + $0x30] sm:$0xff] }
 0x9ba   : > { %v2983_v12 = vld [vmem:[%s555_s3] ss:$0 sm:$0xff] }
 0x9bb   : > { %3273 = vmatpush3.xpose.msk.msra.mxu0 %vm818_vm3, %v2156_v10  ;;  %v2596_v10 = vld [vmem:[%s3786_s13 + $0x38] sm:$0xff] }
 0x9bc   : > { %3277 = vmatprep.subr.mxu0 %v3600_v14 }
 0x9be   : > { %3275 = vmatmul.mubr.msk.f32.vlgmr.msra.gmra.mrb[20].mxu0 %vm818_vm3, %v2079_v13 }
 0x9bf   : > { %3279 = vmatprep.mubr.msk.f32.mxu0 %vm3599_vm1, %v3600_v14  ;;  %3278 = vmatpush3.msra.mxu0 %v2235_v18 }
 0x9c0   : > { %3389 = vmatprep.subr.bf16.mxu0 %v3598_v6 }
 0xa91   : > { %v2310_v11 = vpop.f32.mrb[20].mxu0 }
 0xa92   : > { %v3276_v15 = vpop.f32.mrb[21].mxu0  ;;  %v2314_v27 = vsel %vm818_vm3, %v2310_v11, -inf }
 0xa93   : > { %2315 = vmax.xlane.f32.xlu0 %v2314_v27 }
 0xb20   : > { %v2316_v20 = vpop.xlane.xlu0 %2315 }
 0xb21   : > { %v2317_v21 = vsub.f32 %v2310_v11, %v2316_v20 }
 0xb23   : > { %v2318_v22 = vmul.f32 1.442695, %v2317_v21 }
 0xb25   : > { %3494 = vpow2.f32 %v2318_v22 }
 0xb2f   : > { %v3495_v23 = vpop.eup %3494 }
 0xb30   : > { %3280 = vmatmul.mubr.msk.f32.vlgmr.msra.gmra.mrb[22].mxu0 %vm818_vm3, %v3495_v23  ;;  %v2320_v24 = vsel %vm818_vm3, %v3495_v23, 0.0 }
 0xb31   : > { %2321 = vadd.xlane.f32.xlu1 %v2320_v24  ;;  %3295 = vmatprep.mubr.msk.f32.mxu0 %vm3599_vm1, %v3600_v14 }
 0xb32   : > { %3391 = vmatpush3.bf16.msra.mxu0 %v3390_v48 }
 0xb33   : > { %3392 = vmatprep.subr.bf16.mxu0 %v3598_v6 }
 0xbbe   : > { %v2322_v29 = vpop.xlane.xlu1 %2321 }
 0xbbf   : > { %3496 = vrcp.f32 %v2322_v29 }
 0xbc9   : > { %v3497_v30 = vpop.eup %3496 }
 0xc03   : > { %v2392_v31 = vpop.f32.mrb[22].mxu0 }
 0xc04   : > { %v2397_v32 = vmul.f32 %v3497_v30, %v2392_v31  ;;  %v3281_v33 = vpop.f32.mrb[23].mxu0  ;;  %v2696_v31 = vsub.s32 5, %v3837_v25 }
 0xc06   : > { %3285 = vmatmul.mubr.msk.f32.vlgmr.msra.gmra.mrb[22].mxu1 %vm818_vm3, %v2397_v32  ;;  %v2692_v32 = vrot.slane %v4042_v34, %v2691_v0 }
 0xc07   : > { %3314 = vmatprep.mubr.msk.f32.mxu1 %vm3599_vm1, %v3600_v14  ;;  %3397 = vmatpush3.bf16.msra.mxu1 %v3396_v54 }
 0xc08   : > { %3398 = vmatprep.subr.bf16.mxu1 %v3598_v6 }
 0xc0b   : > { %3400 = vmatpush3.bf16.msra.mxu1 %v3399_v56 }
 0xc0c   : > { %3401 = vmatprep.subr.bf16.mxu1 %v3598_v6 }
 0xc0f   : > { %3403 = vmatpush3.bf16.msra.mxu1 %v3402_v59 }
 0xc10   : > { %3404 = vmatprep.subr.bf16.mxu1 %v3598_v6  ;;  %v3405_v6 = vpack.c.bf16 %v2596_v10, %v2595_v9 }
 0xc13   : > { %3406 = vmatpush3.bf16.msra.mxu1 %v3405_v6 }
 0xcd9   : > { %v2469_v36 = vpop.f32.mrb[22].mxu1 }
 0xcda   : > { %v2473_v38 = vadd.f32 %v2469_v36, %v1999_v2  ;;  %v3286_v39 = vpop.f32.mrb[23].mxu1 }
 0xcdc   : > { %v2478_v40 = vadd.f32 %v2477_v35, %v2473_v38  ;;  %v2697_v35 = vrot.slane %v4042_v34, %v2696_v31 }
 0xcde   : > { %v2479_v41 = vadd.f32 %v2478_v40, %v3817_v19  ;;  %v2507_v19 = vld [vmem:[%s3771_s2 + $0x10] sm:$0xff] }
 0xcdf   : > { %v3393_v50 = vpack.c.bf16 %v2508_v49, %v2507_v19 }
 0xce0   : > { %v2480_v42 = vsel %vm587_vm2, %v2479_v41, 0.0 }
 0xce1   : > { %2481 = vadd.xlane.f32.xlu0 %v2480_v42  ;;  %3394 = vmatpush3.bf16.msra.mxu0 %v3393_v50 }
 0xd6e   : > { %v2482_v14 = vpop.xlane.xlu0 %2481 }
 0xd6f   : > { %v2484_v43 = vmul.f32 0.03125, %v2482_v14 }
 0xd71   : > { %v2485_v44 = vsub.f32 %v2479_v41, %v2484_v43 }
 0xd73   : > { %v2486_v45 = vmul.f32 %v2485_v44, %v2485_v44 }
 0xd75   : > { %v2487_v26 = vsel %vm587_vm2, %v2486_v45, 0.0 }
 0xd76   : > { %2488 = vadd.xlane.f32.xlu1 %v2487_v26 }
 0xe03   : > { %v2489_v60 = vpop.xlane.xlu1 %2488 }
 0xe04   : > { %v2490_v62 = vmul.f32 0.03125, %v2489_v60 }
 0xe06   : > { %v2491_v63 = vadd.f32 1e-05, %v2490_v62 }
 0xe08   : > { %3498 = vrsqrt.f32 %v2491_v63 }
 0xe12   : > { %v3499_v2 = vpop.eup %3498 }
 0xe13   : > { %v2493_v3 = vmul.f32 %v3499_v2, %v2485_v44 }
 0xe15   : > { %v2498_v5 = vmul.f32 %v2497_v1, %v2493_v3 }
 0xe17   : > { %v2503_v7 = vadd.f32 %v2502_v4, %v2498_v5 }
 0xe19   : > { %3296 = vmatmul.mubr.msk.f32.vlgmr.msra.gmra.mrb[24].mxu0 %vm587_vm2, %v2503_v7 }
 0xeec   : > { %v2584_v13 = vpop.f32.mrb[24].mxu0 }
 0xeed   : > { %v2585_v8 = vadd.f32 %v2983_v12, %v2584_v13  ;;  %v3297_v11 = vpop.f32.mrb[25].mxu0 }
 0xeef   : > { %v2588_v15 = vmax.f32 %v2585_v8, 0.0 }
 0xef1   : > { %3315 = vmatmul.mubr.msk.f32.vlgmr.msra.gmra.mrb[24].mxu1 %vm2601_vm4, %v2588_v15 }
 0xfc4   : > { %v2671_v27 = vpop.f32.mrb[24].mxu1 }
 0xfc5   : > { %v2672_v28 = vadd.f32 %v2671_v27, %v2600_v61  ;;  %v3316_v16 = vpop.f32.mrb[25].mxu1 }
 0xfc7   : > { %v2675_v17 = vadd.f32 %v2672_v28, %v2503_v7 }
 0xfc9   : > { %v2676_v18 = vsel %vm587_vm2, %v2675_v17, 0.0 }
 0xfca   : > { %2677 = vadd.xlane.f32.xlu0 %v2676_v18 }
0x1057   : > { %v2678_v20 = vpop.xlane.xlu0 %2677 }
0x1058   : > { %v2679_v21 = vmul.f32 0.03125, %v2678_v20 }
0x105a   : > { %v2680_v22 = vsub.f32 %v2675_v17, %v2679_v21 }
0x105c   : > { %v2681_v23 = vmul.f32 %v2680_v22, %v2680_v22 }
0x105e   : > { %v2682_v24 = vsel %vm587_vm2, %v2681_v23, 0.0 }
0x105f   : > { %2683 = vadd.xlane.f32.xlu1 %v2682_v24 }
0x10ec   : > { %v2684_v37 = vpop.xlane.xlu1 %2683 }
0x10ed   : > { %v2685_v29 = vmul.f32 0.03125, %v2684_v37 }
0x10ef   : > { %v2686_v30 = vadd.f32 1e-05, %v2685_v29 }
0x10f1   : > { %3500 = vrsqrt.f32 %v2686_v30 }
0x10fb   : > { %v3501_v33 = vpop.eup %3500 }
0x10fc   : > { %v2688_v36 = vmul.f32 %v3501_v33, %v2680_v22  ;;  %2703 = sbr.rel (%p2986_p1) target bundleno = 4355 (0x1103), region = 72 }
0x10fe   : > { %v2693_v38 = vmul.f32 %v2692_v32, %v2688_v36 }
0x1100   : > { %v2698_v39 = vadd.f32 %v2697_v35, %v2693_v38 }
0x1102   : > { %2699 = vst.msk [vmem:[#allocation2] sm:$0xff] %vm587_vm2, %v2698_v39  ;;  %2704 = vst.msk [vmem:[%s518_s15] sm:$0xff] (!%p2986_p1), %vm587_vm2, %v2698_v39 }
0x1103 PF: > { %s4194_s3 = sld [smem:[#allocation9_spill]]  ;;  %s4197_s26 = sld [smem:[#allocation23_spill]] }
0x1104   : > { %s4195_s5 = sld [smem:[#allocation7_spill]]  ;;  %s2719_s12 = sshll.u32 %s518_s15, 4  ;;  %s2720_s12 = int_to_ptr.vmem [resolvable:$true] %s2719_s12 }
0x1105   : > { %s3502_s30 = scalar_lea.vmem %s2720_s12, 128  ;;  %s3601_s11 = smov [#allocation3]  }
0x1106   : > { %p3503_p2 = scmp.ne.s32.totalorder %s2720_s12, %s3502_s30  ;;  %s3506_s23 = sshll.u32 %s3601_s11, 4  ;;  %s3507_s23 = int_to_ptr.vmem [resolvable:$false] %s3506_s23 }
0x1107   : > { %s3508_s24 = scalar_lea.vmem %s3507_s23, 256  ;;  %p3509_p6 = scmp.lt.s32.totalorder %s2720_s12, %s3507_s23 }
0x1108   : > { %p3504_p4 = pnand %p3503_p2, %p3711_p3  ;;  %p3510_p7 = scmp.lt.s32.totalorder %s3508_s24, %s3502_s30 }
0x1109   : > { %s2988_s21 = sshll.u32 %s4194_s3, 7 }
0x110a   : > { %s4092_s25 = scalar_lea.hbm %s4197_s26, %s2988_s21  ;;  %s4198_s20 = sand.u32 1, %s4195_s5  }
0x110b   : > { %s2706_s19 = scalar_lea.sflag [#allocation4], %s4198_s20  ;;  %p3505_p5 = pneg %p3504_p4 }
0x110c   : > { %p3511_p8 = por %p3510_p7, %p3509_p6 }
0x110e   : > { %p3512_p10 = pnand %p3511_p8, %p3505_p5 }
0x1110   : > { %3515 = shalt.err (!%p3512_p10)
}
0x1111   : > { %s3516_s16 = scalar_lea.hbm %s4092_s25, 128  ;;  %s3520_s22 = scalar_lea.hbm %s4197_s26, 256 }
0x1112   : > { %p3517_p11 = scmp.ne.s32.totalorder %s4092_s25, %s3516_s16  ;;  %p3521_p0 = scmp.lt.u32.totalorder %s4092_s25, %s4197_s26 }
0x1113   : > { %p3522_p1 = scmp.lt.u32.totalorder %s3520_s22, %s3516_s16  ;;  %p3524_p4 = scmp.lt.u32.totalorder %s3516_s16, %s4092_s25 }
0x1114   : > { %p3518_p12 = pnand %p3517_p11, %p3711_p3 }
0x1115   : > { %p3523_p2 = por %p3522_p1, %p3521_p0 }
0x1116   : > { %p3519_p13 = pneg %p3518_p12 }
0x1117   : > { %p3525_p5 = por %p3524_p4, %p3523_p2 }
0x1119   : > { %p3526_p6 = pnand %p3525_p5, %p3519_p13 }
0x111b   : > { %3529 = shalt.err (!%p3526_p6)
}
0x111c   : > { %3408 = dma.vmem_to_hbm [thread:$0]  (%p3711_p3), %s2720_s12, 128, %s4092_s25, %s2706_s19  }
0x111d PF: > { %s4199_s18 = sld [smem:[#allocation12_spill]]  ;;  %s4200_s0 = sld [smem:[#allocation6_spill]] }
0x1123   : > { %p3414_p7 = scmp.ge.s32.totalorder %s4199_s18, 2  ;;  %s2731_s4 = sand.u32 1, %s4200_s0  }
0x1124   : > { %s2732_s3 = scalar_lea.sflag [#allocation4], %s2731_s4 }
0x1125   : > { %p3411_p8 = pnand %p3414_p7, %p3721_p9 }
0x1127   : > { %3563 = dma.done.wait (!%p3411_p8), %s2732_s3, 128  }
0x1128   : > { %3565 = vsyncadd (!%p3411_p8), %s2732_s3, 4294967168  ;;  %s24_s24 = sadd.s32 1, %s4199_s18   ;;  %s4202_s17 = sld [smem:[#allocation7_spill]] }
0x1129   : > { %p21_p10 = scmp.ge.s32.totalorder %s24_s24, 6   ;;  %s4203_s18 = sld [smem:[#allocation8_spill]] }
0x112a   : > { %s4204_s19 = sld [smem:[#allocation17_spill]]  ;;  %s4205_s20 = sld [smem:[#allocation10_spill]] }
0x112b   : > { %s4206_s21 = sld [smem:[#allocation11_spill]]  ;;  %s4207_s22 = sld [smem:[#allocation13_spill]] }
0x112c   : > { %s4208_s23 = sld [smem:[#allocation15_spill]]  ;;  %23 = sbr.rel (!%p21_p10) target bundleno = 12 (0xc), region = 146 }
0x1133   :  { %2737 = vsyncpa [#allocation4], 1 }
0x1134   :  { %2739 = vsyncpa [#allocation4 + $0x1], 1 }

</bundles_post_ra>
